<compile_context>
chip_gen: v5e
topology: v5e:2x2
jax: 0.10.0
libtpu: 0.0.40
codegen_flags: <defaults>
</compile_context>

<pallas_src>
import functools

import jax
import jax.numpy as jnp
from jax.experimental import pallas as pl
from jax.experimental.pallas import tpu as pltpu


# ---------------------------------------------------------------------------
# Kernel
# ---------------------------------------------------------------------------
def _encoder_kernel(*refs, num_layers):
    """Fused MLP encoder kernel (one batch tile per grid step).

    Ref order:
      x_ref,                                  # (TB, in_dim)   f32 (cast to bf16 here)
      (w_ref, b_ref) * num_layers,            # hidden Linear+ReLU stack (bf16 / f32)
      w_head_ref, b_head_ref,                 # fused [mu | logvar] head
      out_ref                                 # (TB, head_pad) packed output
    """
    x_ref = refs[0]
    layer_refs = refs[1 : 1 + 2 * num_layers]
    w_head_ref = refs[1 + 2 * num_layers]
    b_head_ref = refs[2 + 2 * num_layers]
    out_ref = refs[3 + 2 * num_layers]

    # In-kernel bf16 cast: cheap VPU work hidden under the DMA, avoids an extra
    # HBM pass in the wrapper.
    h = x_ref[...].astype(jnp.bfloat16)
    for i in range(num_layers):
        w = layer_refs[2 * i][...]        # bf16 (k, hidden)
        b = layer_refs[2 * i + 1][...]    # f32  (1, hidden)
        acc = jnp.dot(h, w, preferred_element_type=jnp.float32) + b
        h = jnp.maximum(acc, 0.0).astype(jnp.bfloat16)  # ReLU in f32, bf16 for next MXU op

    out = jnp.dot(h, w_head_ref[...], preferred_element_type=jnp.float32) + b_head_ref[...]
    out_ref[...] = out.astype(out_ref.dtype)


# ---------------------------------------------------------------------------
# Parameter packing (fuse heads, pad ONLY the stored output dim, bf16 weights)
# ---------------------------------------------------------------------------
def _round_up(n, m):
    return ((n + m - 1) // m) * m


def _pad2(a, rows, cols):
    return jnp.pad(a, ((0, rows - a.shape[0]), (0, cols - a.shape[1])))


def pack_params(params, *, lane=128):
    """Fuse mu/logvar heads (pad head out-dim to `lane`); bf16 weights, f32 biases."""
    layers = params["layers"]
    in_dim = layers[0][0].shape[0]
    hidden = params["mu"][0].shape[0]
    latent = params["mu"][0].shape[1]
    head_pad = _round_up(2 * latent, lane)

    packed_layers = [
        (w.astype(jnp.bfloat16), b.astype(jnp.float32)) for (w, b) in layers
    ]

    w_head = jnp.concatenate([params["mu"][0], params["logvar"][0]], axis=1)
    b_head = jnp.concatenate([params["mu"][1], params["logvar"][1]], axis=1)
    w_head_p = _pad2(w_head, hidden, head_pad).astype(jnp.bfloat16)
    b_head_p = _pad2(b_head, 1, head_pad).astype(jnp.float32)

    return {
        "layers": packed_layers,
        "head": (w_head_p, b_head_p),
        "in_dim": in_dim,
        "head_pad": head_pad,
        "latent_dim": latent,
    }


# ---------------------------------------------------------------------------
# pallas_call builder
# ---------------------------------------------------------------------------
def _pallas_forward(flat_inputs, *, tb, in_dim, b_pad, head_pad, num_layers,
                    out_dtype, single_buffer):
    num_blocks = b_pad // tb

    # Constant-index (VMEM-resident) operands: single buffer where supported.
    const_kwargs = {"pipeline_mode": pl.Buffered(1)} if single_buffer else {}

    # x and the output stream per batch tile (auto double-buffered); weights and
    # biases keep a constant block index so they stay VMEM-resident.
    in_specs = [pl.BlockSpec((tb, in_dim), lambda i: (i, 0))]
    for a in flat_inputs[1:]:
        in_specs.append(pl.BlockSpec(a.shape, lambda i: (0, 0), **const_kwargs))

    kernel = functools.partial(_encoder_kernel, num_layers=num_layers)
    return pl.pallas_call(
        kernel,
        grid=(num_blocks,),
        in_specs=in_specs,
        out_specs=pl.BlockSpec((tb, head_pad), lambda i: (i, 0)),
        out_shape=jax.ShapeDtypeStruct((b_pad, head_pad), out_dtype),
        compiler_params=pltpu.CompilerParams(
            dimension_semantics=("parallel",),
            vmem_limit_bytes=32 * 1024 * 1024,
        ),
    )(*flat_inputs)


# ---------------------------------------------------------------------------
# Wrapper
# ---------------------------------------------------------------------------
def encoder_forward(x, packed, *, num_layers, tb=None, out_dtype=jnp.float32,
                    return_packed=False):
    """x: (B, X_dim + num_cond) f32.

    Returns (mu, logvar), each (B, latent) in `out_dtype` — or, with
    return_packed=True, the packed (B, head_pad) slab (mu in cols [:latent],
    logvar in cols [latent:2*latent]) to avoid extra HBM passes downstream.
    """
    B, in_dim = x.shape
    assert in_dim == packed["in_dim"], "feature dim mismatch"
    head_pad = packed["head_pad"]
    latent = packed["latent_dim"]

    if tb is None:
        # Single grid step for small/medium batches; 512-row tiles beyond.
        tb = min(_round_up(max(B, 8), 8), 512)
    b_pad = _round_up(max(B, 8), tb)
    # Only the batch dim is (possibly) padded — the feature (K) dim is streamed
    # at its true width and x keeps its f32 dtype (no wrapper pad/cast pass).
    x_p = x if b_pad == B else jnp.pad(x, ((0, b_pad - B), (0, 0)))

    flat_inputs = [x_p]
    for (w, b) in packed["layers"]:
        flat_inputs += [w, b]
    flat_inputs += [packed["head"][0], packed["head"][1]]

    kwargs = dict(tb=tb, in_dim=in_dim, b_pad=b_pad, head_pad=head_pad,
                  num_layers=num_layers, out_dtype=out_dtype)
    if hasattr(pl, "Buffered"):
        try:
            out = _pallas_forward(flat_inputs, single_buffer=True, **kwargs)
        except Exception:
            # Fallback if Buffered(1) is unsupported in this JAX/Mosaic version.
            out = _pallas_forward(flat_inputs, single_buffer=False, **kwargs)
    else:
        out = _pallas_forward(flat_inputs, single_buffer=False, **kwargs)

    if return_packed:
        return out[:B]
    mu = out[:B, :latent]
    logvar = out[:B, latent : 2 * latent]
    return mu, logvar


# ---------------------------------------------------------------------------
# Synthetic parameters + references
# ---------------------------------------------------------------------------
def init_params(key, X_dim, hidden_dim, latent_dim, num_cond, num_layers):
    """Deterministic synthetic parameters. Weights stored as (in, out) = W.T."""
    def linear(key, fan_in, fan_out):
        kw, kb = jax.random.split(key)
        bound = 1.0 / jnp.sqrt(fan_in)
        w_t = jax.random.uniform(kw, (fan_in, fan_out), jnp.float32, -bound, bound)
        b = jax.random.uniform(kb, (1, fan_out), jnp.float32, -bound, bound)
        return w_t, b

    keys = jax.random.split(key, num_layers + 2)
    layers = [linear(keys[0], X_dim + num_cond, hidden_dim)]
    for i in range(1, num_layers):
        layers.append(linear(keys[i], hidden_dim, hidden_dim))
    mu = linear(keys[num_layers], hidden_dim, latent_dim)
    logvar = linear(keys[num_layers + 1], hidden_dim, latent_dim)
    return {"layers": layers, "mu": mu, "logvar": logvar}


def encoder_reference_f32(x, params):
    """Pure f32 JAX reference of the PyTorch forward pass."""
    h = x
    for (w, b) in params["layers"]:
        h = jax.nn.relu(h @ w + b)
    return (h @ params["mu"][0] + params["mu"][1],
            h @ params["logvar"][0] + params["logvar"][1])


def encoder_reference_bf16(x, params):
    """Reference that mirrors the kernel's bf16-operand / f32-accumulate rounding."""
    h = x.astype(jnp.bfloat16)
    for (w, b) in params["layers"]:
        acc = jnp.dot(h, w.astype(jnp.bfloat16), preferred_element_type=jnp.float32) + b
        h = jnp.maximum(acc, 0.0).astype(jnp.bfloat16)

    def head(w, b):
        return jnp.dot(h, w.astype(jnp.bfloat16), preferred_element_type=jnp.float32) + b

    return head(*params["mu"]), head(*params["logvar"])


# ---------------------------------------------------------------------------
if __name__ == "__main__":
    # Small shapes consistent with the module's forward.
    B, X_dim, num_cond = 256, 24, 8
    hidden_dim, latent_dim, num_layers = 32, 16, 2

    key = jax.random.PRNGKey(0)
    k_params, k_x, k_x2 = jax.random.split(key, 3)
    params = init_params(k_params, X_dim, hidden_dim, latent_dim, num_cond, num_layers)
    packed = pack_params(params)

    # Input already contains the concatenated condition: (B, X_dim + num_cond).
    x = jax.random.normal(k_x, (B, X_dim + num_cond), jnp.float32)

    # --- Single-tile path (tb = B, grid=(1,), no wrapper pad at all) ----------
    mu, logvar = encoder_forward(x, packed, num_layers=num_layers)
    jax.block_until_ready((mu, logvar))

    mu_b, lv_b = encoder_reference_bf16(x, params)
    assert jnp.allclose(mu, mu_b, atol=2e-3, rtol=2e-3)
    assert jnp.allclose(logvar, lv_b, atol=2e-3, rtol=2e-3)

    mu_f, lv_f = encoder_reference_f32(x, params)
    assert jnp.allclose(mu, mu_f, atol=5e-2, rtol=5e-2)
    assert jnp.allclose(logvar, lv_f, atol=5e-2, rtol=5e-2)

    # --- Multi-tile path (ragged batch, tb=512 tiles, batch padded) ----------
    B2 = 1100
    x2 = jax.random.normal(k_x2, (B2, X_dim + num_cond), jnp.float32)
    mu2, lv2 = encoder_forward(x2, packed, num_layers=num_layers, tb=512)
    jax.block_until_ready((mu2, lv2))
    mu2_b, lv2_b = encoder_reference_bf16(x2, params)
    assert mu2.shape == (B2, latent_dim) and lv2.shape == (B2, latent_dim)
    assert jnp.allclose(mu2, mu2_b, atol=2e-3, rtol=2e-3)
    assert jnp.allclose(lv2, lv2_b, atol=2e-3, rtol=2e-3)

    # --- Optional bf16 output (halves store traffic, still lane-dense) -------
    mu3, lv3 = encoder_forward(x, packed, num_layers=num_layers,
                               out_dtype=jnp.bfloat16)
    jax.block_until_ready((mu3, lv3))
    assert jnp.allclose(mu3.astype(jnp.float32), mu_b, atol=2e-2, rtol=2e-2)
    assert jnp.allclose(lv3.astype(jnp.float32), lv_b, atol=2e-2, rtol=2e-2)

    print("KERNEL_OK")
</pallas_src>

<mosaic_0001>
module attributes {stable_mosaic.version = 11 : i64} {
  func.func @_encoder_kernel(%arg0: i32, %arg1: memref<256x32xf32, #tpu.memory_space<vmem>>, %arg2: memref<32x32xbf16, #tpu.memory_space<vmem>>, %arg3: memref<1x32xf32, #tpu.memory_space<vmem>>, %arg4: memref<32x32xbf16, #tpu.memory_space<vmem>>, %arg5: memref<1x32xf32, #tpu.memory_space<vmem>>, %arg6: memref<32x128xbf16, #tpu.memory_space<vmem>>, %arg7: memref<1x128xf32, #tpu.memory_space<vmem>>, %arg8: memref<256x128xf32, #tpu.memory_space<vmem>>) attributes {dimension_semantics = [#tpu.dimension_semantics<parallel>], iteration_bounds = array<i64: 1>, scalar_prefetch = 0 : i64, scratch_operands = 0 : i64, tpu.core_type = #tpu.core_type<tc>, window_params = [{transform_indices = @transform_0, window_bounds = array<i64: 256, 32>}, {pipeline_mode = #tpu.pipeline_mode<synchronous>, transform_indices = @transform_1, window_bounds = array<i64: 32, 32>}, {pipeline_mode = #tpu.pipeline_mode<synchronous>, transform_indices = @transform_2, window_bounds = array<i64: 1, 32>}, {pipeline_mode = #tpu.pipeline_mode<synchronous>, transform_indices = @transform_3, window_bounds = array<i64: 32, 32>}, {pipeline_mode = #tpu.pipeline_mode<synchronous>, transform_indices = @transform_4, window_bounds = array<i64: 1, 32>}, {pipeline_mode = #tpu.pipeline_mode<synchronous>, transform_indices = @transform_5, window_bounds = array<i64: 32, 128>}, {pipeline_mode = #tpu.pipeline_mode<synchronous>, transform_indices = @transform_6, window_bounds = array<i64: 1, 128>}, {transform_indices = @transform_7, window_bounds = array<i64: 256, 128>}]} {
    %c0 = arith.constant 0 : index
    %c0_0 = arith.constant 0 : index
    %0 = vector.load %arg1[%c0, %c0_0] : memref<256x32xf32, #tpu.memory_space<vmem>>, vector<256x32xf32>
    %1 = arith.truncf %0 : vector<256x32xf32> to vector<256x32xbf16>
    %c0_1 = arith.constant 0 : index
    %c0_2 = arith.constant 0 : index
    %2 = vector.load %arg2[%c0_1, %c0_2] : memref<32x32xbf16, #tpu.memory_space<vmem>>, vector<32x32xbf16>
    %c0_3 = arith.constant 0 : index
    %c0_4 = arith.constant 0 : index
    %3 = vector.load %arg3[%c0_3, %c0_4] : memref<1x32xf32, #tpu.memory_space<vmem>>, vector<1x32xf32>
    %cst = arith.constant dense<0.000000e+00> : vector<256x32xf32>
    %4 = tpu.matmul %1, %2, %cst {dimension_numbers = #tpu.dot_dimension_numbers<[1], [0], [0], [1], [0, 0, 1, 1], [], []>} : vector<256x32xbf16>, vector<32x32xbf16>, vector<256x32xf32> -> vector<256x32xf32>
    %5 = vector.broadcast %3 : vector<1x32xf32> to vector<256x32xf32>
    %6 = arith.addf %4, %5 : vector<256x32xf32>
    %cst_5 = arith.constant 0.000000e+00 : f32
    %7 = vector.broadcast %cst_5 : f32 to vector<256x32xf32>
    %8 = arith.maximumf %6, %7 : vector<256x32xf32>
    %9 = arith.truncf %8 : vector<256x32xf32> to vector<256x32xbf16>
    %c0_6 = arith.constant 0 : index
    %c0_7 = arith.constant 0 : index
    %10 = vector.load %arg4[%c0_6, %c0_7] : memref<32x32xbf16, #tpu.memory_space<vmem>>, vector<32x32xbf16>
    %c0_8 = arith.constant 0 : index
    %c0_9 = arith.constant 0 : index
    %11 = vector.load %arg5[%c0_8, %c0_9] : memref<1x32xf32, #tpu.memory_space<vmem>>, vector<1x32xf32>
    %cst_10 = arith.constant dense<0.000000e+00> : vector<256x32xf32>
    %12 = tpu.matmul %9, %10, %cst_10 {dimension_numbers = #tpu.dot_dimension_numbers<[1], [0], [0], [1], [0, 0, 1, 1], [], []>} : vector<256x32xbf16>, vector<32x32xbf16>, vector<256x32xf32> -> vector<256x32xf32>
    %13 = vector.broadcast %11 : vector<1x32xf32> to vector<256x32xf32>
    %14 = arith.addf %12, %13 : vector<256x32xf32>
    %cst_11 = arith.constant 0.000000e+00 : f32
    %15 = vector.broadcast %cst_11 : f32 to vector<256x32xf32>
    %16 = arith.maximumf %14, %15 : vector<256x32xf32>
    %17 = arith.truncf %16 : vector<256x32xf32> to vector<256x32xbf16>
    %c0_12 = arith.constant 0 : index
    %c0_13 = arith.constant 0 : index
    %18 = vector.load %arg6[%c0_12, %c0_13] : memref<32x128xbf16, #tpu.memory_space<vmem>>, vector<32x128xbf16>
    %cst_14 = arith.constant dense<0.000000e+00> : vector<256x128xf32>
    %19 = tpu.matmul %17, %18, %cst_14 {dimension_numbers = #tpu.dot_dimension_numbers<[1], [0], [0], [1], [0, 0, 1, 1], [], []>} : vector<256x32xbf16>, vector<32x128xbf16>, vector<256x128xf32> -> vector<256x128xf32>
    %c0_15 = arith.constant 0 : index
    %c0_16 = arith.constant 0 : index
    %20 = vector.load %arg7[%c0_15, %c0_16] : memref<1x128xf32, #tpu.memory_space<vmem>>, vector<1x128xf32>
    %21 = vector.broadcast %20 : vector<1x128xf32> to vector<256x128xf32>
    %22 = arith.addf %19, %21 : vector<256x128xf32>
    %c0_17 = arith.constant 0 : index
    %c0_18 = arith.constant 0 : index
    %23 = vector.load %arg8[%c0_17, %c0_18] : memref<256x128xf32, #tpu.memory_space<vmem>>, vector<256x128xf32>
    tpu.vector_store %arg8[%c0_17, %c0_18], %22 {strides = array<i32>} : memref<256x128xf32, #tpu.memory_space<vmem>>, vector<256x128xf32>,
    return
  }
  func.func @transform_0(%arg0: i32) -> (i32, i32) {
    %c0_i32 = arith.constant 0 : i32
    %c0_i32_0 = arith.constant 0 : i32
    return %arg0, %c0_i32 : i32, i32
  }
  func.func @transform_1(%arg0: i32) -> (i32, i32) {
    %c0_i32 = arith.constant 0 : i32
    %c0_i32_0 = arith.constant 0 : i32
    %c0_i32_1 = arith.constant 0 : i32
    return %c0_i32, %c0_i32_0 : i32, i32
  }
  func.func @transform_2(%arg0: i32) -> (i32, i32) {
    %c0_i32 = arith.constant 0 : i32
    %c0_i32_0 = arith.constant 0 : i32
    %c0_i32_1 = arith.constant 0 : i32
    return %c0_i32, %c0_i32_0 : i32, i32
  }
  func.func @transform_3(%arg0: i32) -> (i32, i32) {
    %c0_i32 = arith.constant 0 : i32
    %c0_i32_0 = arith.constant 0 : i32
    %c0_i32_1 = arith.constant 0 : i32
    return %c0_i32, %c0_i32_0 : i32, i32
  }
  func.func @transform_4(%arg0: i32) -> (i32, i32) {
    %c0_i32 = arith.constant 0 : i32
    %c0_i32_0 = arith.constant 0 : i32
    %c0_i32_1 = arith.constant 0 : i32
    return %c0_i32, %c0_i32_0 : i32, i32
  }
  func.func @transform_5(%arg0: i32) -> (i32, i32) {
    %c0_i32 = arith.constant 0 : i32
    %c0_i32_0 = arith.constant 0 : i32
    %c0_i32_1 = arith.constant 0 : i32
    return %c0_i32, %c0_i32_0 : i32, i32
  }
  func.func @transform_6(%arg0: i32) -> (i32, i32) {
    %c0_i32 = arith.constant 0 : i32
    %c0_i32_0 = arith.constant 0 : i32
    %c0_i32_1 = arith.constant 0 : i32
    return %c0_i32, %c0_i32_0 : i32, i32
  }
  func.func @transform_7(%arg0: i32) -> (i32, i32) {
    %c0_i32 = arith.constant 0 : i32
    %c0_i32_0 = arith.constant 0 : i32
    return %arg0, %c0_i32 : i32, i32
  }
}

module attributes {stable_mosaic.version = 11 : i64} {
  func.func @_encoder_kernel(%arg0: i32, %arg1: memref<256x32xf32, #tpu.memory_space<vmem>>, %arg2: memref<32x32xbf16, #tpu.memory_space<vmem>>, %arg3: memref<1x32xf32, #tpu.memory_space<vmem>>, %arg4: memref<32x32xbf16, #tpu.memory_space<vmem>>, %arg5: memref<1x32xf32, #tpu.memory_space<vmem>>, %arg6: memref<32x128xbf16, #tpu.memory_space<vmem>>, %arg7: memref<1x128xf32, #tpu.memory_space<vmem>>, %arg8: memref<256x128xf32, #tpu.memory_space<vmem>>) attributes {dimension_semantics = [#tpu.dimension_semantics<parallel>], iteration_bounds = array<i64: 1>, scalar_prefetch = 0 : i64, scratch_operands = 0 : i64, tpu.core_type = #tpu.core_type<tc>, window_params = [{transform_indices = @transform_0, window_bounds = array<i64: 256, 32>}, {pipeline_mode = #tpu.pipeline_mode<synchronous>, transform_indices = @transform_1, window_bounds = array<i64: 32, 32>}, {pipeline_mode = #tpu.pipeline_mode<synchronous>, transform_indices = @transform_2, window_bounds = array<i64: 1, 32>}, {pipeline_mode = #tpu.pipeline_mode<synchronous>, transform_indices = @transform_3, window_bounds = array<i64: 32, 32>}, {pipeline_mode = #tpu.pipeline_mode<synchronous>, transform_indices = @transform_4, window_bounds = array<i64: 1, 32>}, {pipeline_mode = #tpu.pipeline_mode<synchronous>, transform_indices = @transform_5, window_bounds = array<i64: 32, 128>}, {pipeline_mode = #tpu.pipeline_mode<synchronous>, transform_indices = @transform_6, window_bounds = array<i64: 1, 128>}, {transform_indices = @transform_7, window_bounds = array<i64: 256, 128>}]} {
    %c0 = arith.constant 0 : index
    %c0_0 = arith.constant 0 : index
    %0 = vector.load %arg1[%c0, %c0_0] : memref<256x32xf32, #tpu.memory_space<vmem>>, vector<256x32xf32>
    %1 = arith.truncf %0 : vector<256x32xf32> to vector<256x32xbf16>
    %c0_1 = arith.constant 0 : index
    %c0_2 = arith.constant 0 : index
    %2 = vector.load %arg2[%c0_1, %c0_2] : memref<32x32xbf16, #tpu.memory_space<vmem>>, vector<32x32xbf16>
    %c0_3 = arith.constant 0 : index
    %c0_4 = arith.constant 0 : index
    %3 = vector.load %arg3[%c0_3, %c0_4] : memref<1x32xf32, #tpu.memory_space<vmem>>, vector<1x32xf32>
    %cst = arith.constant dense<0.000000e+00> : vector<256x32xf32>
    %4 = tpu.matmul %1, %2, %cst {dimension_numbers = #tpu.dot_dimension_numbers<[1], [0], [0], [1], [0, 0, 1, 1], [], []>} : vector<256x32xbf16>, vector<32x32xbf16>, vector<256x32xf32> -> vector<256x32xf32>
    %5 = vector.broadcast %3 : vector<1x32xf32> to vector<256x32xf32>
    %6 = arith.addf %4, %5 : vector<256x32xf32>
    %cst_5 = arith.constant 0.000000e+00 : f32
    %7 = vector.broadcast %cst_5 : f32 to vector<256x32xf32>
    %8 = arith.maximumf %6, %7 : vector<256x32xf32>
    %9 = arith.truncf %8 : vector<256x32xf32> to vector<256x32xbf16>
    %c0_6 = arith.constant 0 : index
    %c0_7 = arith.constant 0 : index
    %10 = vector.load %arg4[%c0_6, %c0_7] : memref<32x32xbf16, #tpu.memory_space<vmem>>, vector<32x32xbf16>
    %c0_8 = arith.constant 0 : index
    %c0_9 = arith.constant 0 : index
    %11 = vector.load %arg5[%c0_8, %c0_9] : memref<1x32xf32, #tpu.memory_space<vmem>>, vector<1x32xf32>
    %cst_10 = arith.constant dense<0.000000e+00> : vector<256x32xf32>
    %12 = tpu.matmul %9, %10, %cst_10 {dimension_numbers = #tpu.dot_dimension_numbers<[1], [0], [0], [1], [0, 0, 1, 1], [], []>} : vector<256x32xbf16>, vector<32x32xbf16>, vector<256x32xf32> -> vector<256x32xf32>
    %13 = vector.broadcast %11 : vector<1x32xf32> to vector<256x32xf32>
    %14 = arith.addf %12, %13 : vector<256x32xf32>
    %cst_11 = arith.constant 0.000000e+00 : f32
    %15 = vector.broadcast %cst_11 : f32 to vector<256x32xf32>
    %16 = arith.maximumf %14, %15 : vector<256x32xf32>
    %17 = arith.truncf %16 : vector<256x32xf32> to vector<256x32xbf16>
    %c0_12 = arith.constant 0 : index
    %c0_13 = arith.constant 0 : index
    %18 = vector.load %arg6[%c0_12, %c0_13] : memref<32x128xbf16, #tpu.memory_space<vmem>>, vector<32x128xbf16>
    %cst_14 = arith.constant dense<0.000000e+00> : vector<256x128xf32>
    %19 = tpu.matmul %17, %18, %cst_14 {dimension_numbers = #tpu.dot_dimension_numbers<[1], [0], [0], [1], [0, 0, 1, 1], [], []>} : vector<256x32xbf16>, vector<32x128xbf16>, vector<256x128xf32> -> vector<256x128xf32>
    %c0_15 = arith.constant 0 : index
    %c0_16 = arith.constant 0 : index
    %20 = vector.load %arg7[%c0_15, %c0_16] : memref<1x128xf32, #tpu.memory_space<vmem>>, vector<1x128xf32>
    %21 = vector.broadcast %20 : vector<1x128xf32> to vector<256x128xf32>
    %22 = arith.addf %19, %21 : vector<256x128xf32>
    %c0_17 = arith.constant 0 : index
    %c0_18 = arith.constant 0 : index
    %23 = vector.load %arg8[%c0_17, %c0_18] : memref<256x128xf32, #tpu.memory_space<vmem>>, vector<256x128xf32>
    tpu.vector_store %arg8[%c0_17, %c0_18], %22 {strides = array<i32>} : memref<256x128xf32, #tpu.memory_space<vmem>>, vector<256x128xf32>,
    return
  }
  func.func @transform_0(%arg0: i32) -> (i32, i32) {
    %c0_i32 = arith.constant 0 : i32
    %c0_i32_0 = arith.constant 0 : i32
    return %arg0, %c0_i32 : i32, i32
  }
  func.func @transform_1(%arg0: i32) -> (i32, i32) {
    %c0_i32 = arith.constant 0 : i32
    %c0_i32_0 = arith.constant 0 : i32
    %c0_i32_1 = arith.constant 0 : i32
    return %c0_i32, %c0_i32_0 : i32, i32
  }
  func.func @transform_2(%arg0: i32) -> (i32, i32) {
    %c0_i32 = arith.constant 0 : i32
    %c0_i32_0 = arith.constant 0 : i32
    %c0_i32_1 = arith.constant 0 : i32
    return %c0_i32, %c0_i32_0 : i32, i32
  }
  func.func @transform_3(%arg0: i32) -> (i32, i32) {
    %c0_i32 = arith.constant 0 : i32
    %c0_i32_0 = arith.constant 0 : i32
    %c0_i32_1 = arith.constant 0 : i32
    return %c0_i32, %c0_i32_0 : i32, i32
  }
  func.func @transform_4(%arg0: i32) -> (i32, i32) {
    %c0_i32 = arith.constant 0 : i32
    %c0_i32_0 = arith.constant 0 : i32
    %c0_i32_1 = arith.constant 0 : i32
    return %c0_i32, %c0_i32_0 : i32, i32
  }
  func.func @transform_5(%arg0: i32) -> (i32, i32) {
    %c0_i32 = arith.constant 0 : i32
    %c0_i32_0 = arith.constant 0 : i32
    %c0_i32_1 = arith.constant 0 : i32
    return %c0_i32, %c0_i32_0 : i32, i32
  }
  func.func @transform_6(%arg0: i32) -> (i32, i32) {
    %c0_i32 = arith.constant 0 : i32
    %c0_i32_0 = arith.constant 0 : i32
    %c0_i32_1 = arith.constant 0 : i32
    return %c0_i32, %c0_i32_0 : i32, i32
  }
  func.func @transform_7(%arg0: i32) -> (i32, i32) {
    %c0_i32 = arith.constant 0 : i32
    %c0_i32_0 = arith.constant 0 : i32
    return %arg0, %c0_i32 : i32, i32
  }
}

</mosaic_0001>

<bundles_post_ra>
// kernel: tpu_custom_call.1
= control target key start
LH: loop header
LB: loop body
LE: loop exit
PB: predicated region body
PF: predicated region fallthrough
CT: control target
= control target key end

     0   :  { %s1129_s0 = inlined_call_operand.vmem [shape: f32[256,32], index: 0, kind: input, shape index: {}]   ;;  %s1130_s1 = inlined_call_operand.vmem [shape: bf16[32,32], index: 1, kind: input, shape index: {}]   ;;  %s1131_s2 = inlined_call_operand.vmem [shape: f32[1,32], index: 2, kind: input, shape index: {}]   ;;  %s1132_s3 = inlined_call_operand.vmem [shape: bf16[32,32], index: 3, kind: input, shape index: {}]   ;;  %s1133_s4 = inlined_call_operand.vmem [shape: f32[1,32], index: 4, kind: input, shape index: {}]   ;;  %s1134_s5 = inlined_call_operand.vmem [shape: bf16[32,128], index: 5, kind: input, shape index: {}]   ;;  %s1135_s6 = inlined_call_operand.vmem [shape: f32[1,128], index: 6, kind: input, shape index: {}]   ;;  %s1136_s7 = inlined_call_operand.hbm [shape: f32[256,128], index: 7, kind: output, shape index: {}]  }
   0x1   :  { %v767_v0 = vld [vmem:[%s1130_s1 + $0x8] sm:$0xff]  ;;  %v766_v1 = vld [vmem:[%s1130_s1] sm:$0xff] }
   0x2   :  { %151 = vmatpush.bf16.msra.mxu0 %v767_v0  ;;  %v28_v2 = vld [vmem:[%s1129_s0] sm:$0xff]  ;;  %v29_v3 = vld [vmem:[%s1129_s0 + $0x8] sm:$0xff]  ;;  %772 = vmatpush.bf16.msra.mxu3 %v767_v0 }
   0x3   :  { %12 = vsyncpa [#allocation3], 0  ;;  %v60_v4 = vpack.c.bf16 %v29_v3, %v28_v2  ;;  %vm96_vm0 = vcmask 261120   ;;  %v30_v5 = vld [vmem:[%s1129_s0 + $0x10] sm:$0xff]  ;;  %v31_v6 = vld [vmem:[%s1129_s0 + $0x18] sm:$0xff]  ;;  %s811_s9 = smov 128  }
   0x4   :  { %v61_v7 = vpack.c.bf16 %v31_v6, %v30_v5  ;;  %v32_v8 = vld [vmem:[%s1129_s0 + $0x20] sm:$0xff]  ;;  %v33_v9 = vld [vmem:[%s1129_s0 + $0x28] sm:$0xff]  ;;  %v34_v11 = vld [vmem:[%s1129_s0 + $0x30] sm:$0xff]  ;;  %s812_s10 = smov 8  }
   0x5   :  { %v62_v10 = vpack.c.bf16 %v33_v9, %v32_v8  ;;  %v35_v12 = vld [vmem:[%s1129_s0 + $0x38] sm:$0xff]  ;;  %v52_v14 = vld [vmem:[%s1129_s0 + $0xc0] sm:$0xff]  ;;  %v53_v15 = vld [vmem:[%s1129_s0 + $0xc8] sm:$0xff] }
   0x6   :  { %152 = vmatpush.bf16.msra.mxu0 %v766_v1  ;;  %773 = vmatpush.bf16.msra.mxu3 %v766_v1  ;;  %v63_v13 = vpack.c.bf16 %v35_v12, %v34_v11  ;;  %v72_v16 = vpack.c.bf16 %v53_v15, %v52_v14  ;;  %v36_v17 = vld [vmem:[%s1129_s0 + $0x40] sm:$0xff]  ;;  %v37_v18 = vld [vmem:[%s1129_s0 + $0x48] sm:$0xff]  ;;  %v54_v20 = vld [vmem:[%s1129_s0 + $0xd0] sm:$0xff] }
   0x7   :  { %v64_v19 = vpack.c.bf16 %v37_v18, %v36_v17  ;;  %v55_v21 = vld [vmem:[%s1129_s0 + $0xd8] sm:$0xff]  ;;  %v38_v23 = vld [vmem:[%s1129_s0 + $0x50] sm:$0xff]  ;;  %v56_v26 = vld [vmem:[%s1129_s0 + $0xe0] sm:$0xff] }
   0x8   :  { %v73_v22 = vpack.c.bf16 %v55_v21, %v54_v20  ;;  %v39_v24 = vld [vmem:[%s1129_s0 + $0x58] sm:$0xff]  ;;  %v57_v27 = vld [vmem:[%s1129_s0 + $0xe8] sm:$0xff]  ;;  %v40_v29 = vld [vmem:[%s1129_s0 + $0x60] sm:$0xff] }
   0x9   :  { %702 = vmatmul.msk.bf16.vlgmr.msra.gmra.mxu0 %vm96_vm0, %v60_v4  ;;  %714 = vmatmul.msk.bf16.vlgmr.msra.gmra.mxu3 %vm96_vm0, %v72_v16  ;;  %v65_v25 = vpack.c.bf16 %v39_v24, %v38_v23  ;;  %v74_v28 = vpack.c.bf16 %v57_v27, %v56_v26  ;;  %v41_v30 = vld [vmem:[%s1129_s0 + $0x68] sm:$0xff]  ;;  %v768_v33 = vld [vmem:[%s1132_s3] sm:$0xff]  ;;  %v42_v34 = vld [vmem:[%s1129_s0 + $0x70] sm:$0xff] }
   0xa   :  { %v66_v31 = vpack.c.bf16 %v41_v30, %v40_v29  ;;  %v769_v32 = vld [vmem:[%s1132_s3 + $0x8] sm:$0xff]  ;;  %v43_v35 = vld [vmem:[%s1129_s0 + $0x78] sm:$0xff]  ;;  %v58_v36 = vld [vmem:[%s1129_s0 + $0xf0] sm:$0xff]  ;;  %s682_s3 = sshll.u32 %s1136_s7, 4  ;;  %s683_s3 = int_to_ptr.hbm [resolvable:$true] %s682_s3 }
   0xb   :  { %356 = vmatpush.bf16.msra.mxu1 %v769_v32  ;;  %774 = vmatpush.bf16.msrb.mxu3 %v769_v32  ;;  %v59_v37 = vld [vmem:[%s1129_s0 + $0xf8] sm:$0xff]  ;;  %v67_v39 = vpack.c.bf16 %v43_v35, %v42_v34  ;;  %v44_v40 = vld [vmem:[%s1129_s0 + $0x80] sm:$0xff]  ;;  %v45_v41 = vld [vmem:[%s1129_s0 + $0x88] sm:$0xff] }
   0xc   :  { %v75_v38 = vpack.c.bf16 %v59_v37, %v58_v36  ;;  %v68_v42 = vpack.c.bf16 %v45_v41, %v44_v40  ;;  %v958_v44 = vld [vmem:[%s1131_s2] ss:$0 sm:$0xff]  ;;  %v46_v50 = vld [vmem:[%s1129_s0 + $0x90] sm:$0xff]  ;;  %v47_v51 = vld [vmem:[%s1129_s0 + $0x98] sm:$0xff] }
   0xd   :  { %v69_v53 = vpack.c.bf16 %v47_v51, %v46_v50  ;;  %v48_v60 = vld [vmem:[%s1129_s0 + $0xa0] sm:$0xff]  ;;  %v49_v61 = vld [vmem:[%s1129_s0 + $0xa8] sm:$0xff]  ;;  %v50_v6 = vld [vmem:[%s1129_s0 + $0xb0] sm:$0xff] }
   0xe   :  { %v70_v63 = vpack.c.bf16 %v49_v61, %v48_v60 }
   0xf   :  { %357 = vmatpush.bf16.msra.mxu1 %v768_v33  ;;  %775 = vmatpush.bf16.msrb.mxu3 %v768_v33 }
  0x19   :  { %703 = vmatmul.msk.bf16.gmra.mxu0 %vm96_vm0, %v61_v7  ;;  %715 = vmatmul.msk.bf16.gmra.mxu3 %vm96_vm0, %v73_v22  ;;  %v51_v7 = vld [vmem:[%s1129_s0 + $0xb8] sm:$0xff] }
  0x1a   :  { %v71_v9 = vpack.c.bf16 %v51_v7, %v50_v6 }
  0x29   :  { %704 = vmatmul.msk.bf16.gmra.mxu0 %vm96_vm0, %v62_v10  ;;  %716 = vmatmul.msk.bf16.gmra.mxu3 %vm96_vm0, %v74_v28 }
  0x39   :  { %705 = vmatmul.msk.bf16.gmra.mxu0 %vm96_vm0, %v63_v13  ;;  %717 = vmatmul.msk.bf16.gmra.mxu3 %vm96_vm0, %v75_v38 }
  0x49   :  { %706 = vmatmul.msk.bf16.gmra.mxu0 %vm96_vm0, %v64_v19 }
  0x59   :  { %707 = vmatmul.msk.bf16.gmra.mxu0 %vm96_vm0, %v65_v25 }
  0x69   :  { %708 = vmatmul.msk.bf16.gmra.mxu0 %vm96_vm0, %v66_v31 }
  0x79   :  { %709 = vmatmul.msk.bf16.gmra.mxu0 %vm96_vm0, %v67_v39 }
  0x86   :  { %v154_v43 = vpop.f32.mrf.mxu0 }
  0x87   :  { %v155_v45 = vadd.f32 %v958_v44, %v154_v43 }
  0x89   :  { %710 = vmatmul.msk.bf16.gmra.mxu0 %vm96_vm0, %v68_v42  ;;  %v234_v48 = vmax.f32 %v155_v45, 0.0 }
  0x8c   :  { %v214_v18 = vpop.f32.mrf.mxu3 }
  0x8d   :  { %v215_v20 = vadd.f32 %v958_v44, %v214_v18 }
  0x8e   :  { %v156_v46 = vpop.f32.mrf.mxu0 }
  0x8f   :  { %v157_v47 = vadd.f32 %v958_v44, %v156_v46  ;;  %v258_v26 = vmax.f32 %v215_v20, 0.0  ;;  %v1029_v20 = vld [vmem:[%s1133_s4] ss:$0 sm:$0xff] }
  0x91   :  { %v235_v49 = vmax.f32 %v157_v47, 0.0 }
  0x93   :  { %v266_v52 = vpack.c.bf16 %v235_v49, %v234_v48 }
  0x94   :  { %v216_v23 = vpop.f32.mrf.mxu3 }
  0x95   :  { %726 = vmatmul.msk.bf16.vlgmr.msra.gmra.mxu1 %vm96_vm0, %v266_v52  ;;  %v217_v27 = vadd.f32 %v958_v44, %v216_v23 }
  0x96   :  { %v159_v54 = vpop.f32.mrf.mxu0 }
  0x97   :  { %v160_v55 = vadd.f32 %v958_v44, %v159_v54  ;;  %v259_v29 = vmax.f32 %v217_v27, 0.0 }
  0x99   :  { %711 = vmatmul.msk.bf16.gmra.mxu0 %vm96_vm0, %v69_v53  ;;  %v236_v58 = vmax.f32 %v160_v55, 0.0  ;;  %v278_v30 = vpack.c.bf16 %v259_v29, %v258_v26 }
  0x9b   :  { %738 = vmatmul.msk.bf16.vlgmr.msrb.gmra.mxu3 %vm96_vm0, %v278_v30 }
  0x9c   :  { %v219_v32 = vpop.f32.mrf.mxu3 }
  0x9d   :  { %v220_v34 = vadd.f32 %v958_v44, %v219_v32 }
  0x9e   :  { %v161_v56 = vpop.f32.mrf.mxu0 }
  0x9f   :  { %v162_v57 = vadd.f32 %v958_v44, %v161_v56  ;;  %v260_v40 = vmax.f32 %v220_v34, 0.0 }
  0xa1   :  { %v237_v59 = vmax.f32 %v162_v57, 0.0 }
  0xa3   :  { %v267_v62 = vpack.c.bf16 %v237_v59, %v236_v58 }
  0xa4   :  { %v221_v37 = vpop.f32.mrf.mxu3 }
  0xa5   :  { %727 = vmatmul.msk.bf16.gmra.mxu1 %vm96_vm0, %v267_v62  ;;  %v222_v41 = vadd.f32 %v958_v44, %v221_v37  ;;  %v771_v62 = vld [vmem:[%s1134_s5 + $0x8] sm:$0xff] }
  0xa6   :  { %v164_v0 = vpop.f32.mrf.mxu0  ;;  %561 = vmatpush.bf16.msra.mxu2 %v771_v62  ;;  %776 = vmatpush.bf16.msra.mxu3 %v771_v62 }
  0xa7   :  { %v165_v1 = vadd.f32 %v958_v44, %v164_v0  ;;  %v261_v43 = vmax.f32 %v222_v41, 0.0 }
  0xa9   :  { %712 = vmatmul.msk.bf16.gmra.mxu0 %vm96_vm0, %v70_v63  ;;  %v238_v4 = vmax.f32 %v165_v1, 0.0  ;;  %v279_v45 = vpack.c.bf16 %v261_v43, %v260_v40  ;;  %v770_v63 = vld [vmem:[%s1134_s5] sm:$0xff] }
  0xaa   :  { %562 = vmatpush.bf16.msra.mxu2 %v770_v63  ;;  %777 = vmatpush.bf16.msra.mxu3 %v770_v63 }
  0xab   :  { %739 = vmatmul.msk.bf16.gmra.mxu3 %vm96_vm0, %v279_v45 }
  0xac   :  { %v224_v47 = vpop.f32.mrf.mxu3 }
  0xad   :  { %v225_v49 = vadd.f32 %v958_v44, %v224_v47 }
  0xae   :  { %v166_v2 = vpop.f32.mrf.mxu0 }
  0xaf   :  { %v167_v3 = vadd.f32 %v958_v44, %v166_v2  ;;  %v262_v55 = vmax.f32 %v225_v49, 0.0 }
  0xb1   :  { %v239_v5 = vmax.f32 %v167_v3, 0.0 }
  0xb3   :  { %v268_v8 = vpack.c.bf16 %v239_v5, %v238_v4 }
  0xb4   :  { %v226_v52 = vpop.f32.mrf.mxu3 }
  0xb5   :  { %728 = vmatmul.msk.bf16.gmra.mxu1 %vm96_vm0, %v268_v8  ;;  %v227_v56 = vadd.f32 %v958_v44, %v226_v52 }
  0xb6   :  { %v169_v10 = vpop.f32.mrf.mxu0 }
  0xb7   :  { %v170_v11 = vadd.f32 %v958_v44, %v169_v10  ;;  %v263_v58 = vmax.f32 %v227_v56, 0.0 }
  0xb9   :  { %713 = vmatmul.msk.bf16.gmra.mxu0 %vm96_vm0, %v71_v9  ;;  %v240_v14 = vmax.f32 %v170_v11, 0.0  ;;  %v280_v59 = vpack.c.bf16 %v263_v58, %v262_v55 }
  0xbb   :  { %740 = vmatmul.msk.bf16.gmra.mxu3 %vm96_vm0, %v280_v59 }
  0xbc   :  { %v229_v61 = vpop.f32.mrf.mxu3 }
  0xbd   :  { %v230_v1 = vadd.f32 %v958_v44, %v229_v61 }
  0xbe   :  { %v171_v12 = vpop.f32.mrf.mxu0 }
  0xbf   :  { %v172_v13 = vadd.f32 %v958_v44, %v171_v12  ;;  %v264_v7 = vmax.f32 %v230_v1, 0.0 }
  0xc1   :  { %v241_v15 = vmax.f32 %v172_v13, 0.0 }
  0xc3   :  { %v269_v16 = vpack.c.bf16 %v241_v15, %v240_v14 }
  0xc4   :  { %v231_v4 = vpop.f32.mrf.mxu3 }
  0xc5   :  { %729 = vmatmul.msk.bf16.gmra.mxu1 %vm96_vm0, %v269_v16  ;;  %v232_v8 = vadd.f32 %v958_v44, %v231_v4 }
  0xc6   :  { %v174_v17 = vpop.f32.mrf.mxu0 }
  0xc7   :  { %v175_v19 = vadd.f32 %v958_v44, %v174_v17  ;;  %v265_v10 = vmax.f32 %v232_v8, 0.0 }
  0xc9   :  { %v242_v24 = vmax.f32 %v175_v19, 0.0  ;;  %v281_v11 = vpack.c.bf16 %v265_v10, %v264_v7 }
  0xcb   :  { %741 = vmatmul.msk.bf16.gmra.mxu3 %vm96_vm0, %v281_v11 }
  0xce   :  { %v176_v21 = vpop.f32.mrf.mxu0 }
  0xcf   :  { %v177_v22 = vadd.f32 %v958_v44, %v176_v21 }
  0xd1   :  { %v243_v25 = vmax.f32 %v177_v22, 0.0 }
  0xd3   :  { %v270_v28 = vpack.c.bf16 %v243_v25, %v242_v24 }
  0xd5   :  { %730 = vmatmul.msk.bf16.gmra.mxu1 %vm96_vm0, %v270_v28 }
  0xd6   :  { %v179_v31 = vpop.f32.mrf.mxu0 }
  0xd7   :  { %v180_v33 = vadd.f32 %v958_v44, %v179_v31 }
  0xd9   :  { %v244_v38 = vmax.f32 %v180_v33, 0.0 }
  0xde   :  { %v181_v35 = vpop.f32.mrf.mxu0 }
  0xdf   :  { %v182_v36 = vadd.f32 %v958_v44, %v181_v35 }
  0xe1   :  { %v245_v39 = vmax.f32 %v182_v36, 0.0 }
  0xe3   :  { %v271_v42 = vpack.c.bf16 %v245_v39, %v244_v38 }
  0xe5   :  { %731 = vmatmul.msk.bf16.gmra.mxu1 %vm96_vm0, %v271_v42 }
  0xe6   :  { %v184_v46 = vpop.f32.mrf.mxu0 }
  0xe7   :  { %v185_v48 = vadd.f32 %v958_v44, %v184_v46 }
  0xe9   :  { %v246_v53 = vmax.f32 %v185_v48, 0.0 }
  0xee   :  { %v186_v50 = vpop.f32.mrf.mxu0 }
  0xef   :  { %v187_v51 = vadd.f32 %v958_v44, %v186_v50 }
  0xf1   :  { %v247_v54 = vmax.f32 %v187_v51, 0.0 }
  0xf3   :  { %v272_v57 = vpack.c.bf16 %v247_v54, %v246_v53 }
  0xf5   :  { %732 = vmatmul.msk.bf16.gmra.mxu1 %vm96_vm0, %v272_v57 }
  0xf6   :  { %v189_v60 = vpop.f32.mrf.mxu0 }
  0xf7   :  { %v190_v0 = vadd.f32 %v958_v44, %v189_v60 }
  0xf9   :  { %v248_v5 = vmax.f32 %v190_v0, 0.0 }
  0xfe   :  { %v191_v2 = vpop.f32.mrf.mxu0 }
  0xff   :  { %v192_v3 = vadd.f32 %v958_v44, %v191_v2 }
 0x101   :  { %v249_v6 = vmax.f32 %v192_v3, 0.0 }
 0x103   :  { %v273_v9 = vpack.c.bf16 %v249_v6, %v248_v5 }
 0x105   :  { %733 = vmatmul.msk.bf16.gmra.mxu1 %vm96_vm0, %v273_v9 }
 0x106   :  { %v194_v12 = vpop.f32.mrf.mxu0 }
 0x107   :  { %v195_v13 = vadd.f32 %v958_v44, %v194_v12 }
 0x109   :  { %v250_v16 = vmax.f32 %v195_v13, 0.0 }
 0x10e   :  { %v196_v14 = vpop.f32.mrf.mxu0 }
 0x10f   :  { %v197_v15 = vadd.f32 %v958_v44, %v196_v14 }
 0x111   :  { %v251_v17 = vmax.f32 %v197_v15, 0.0 }
 0x112   :  { %v359_v18 = vpop.f32.mrf.mxu1 }
 0x113   :  { %v274_v19 = vpack.c.bf16 %v251_v17, %v250_v16  ;;  %v360_v22 = vadd.f32 %v1029_v20, %v359_v18 }
 0x115   :  { %734 = vmatmul.msk.bf16.gmra.mxu1 %vm96_vm0, %v274_v19  ;;  %v439_v25 = vmax.f32 %v360_v22, 0.0 }
 0x116   :  { %v199_v21 = vpop.f32.mrf.mxu0 }
 0x117   :  { %v200_v26 = vadd.f32 %v958_v44, %v199_v21 }
 0x119   :  { %v252_v31 = vmax.f32 %v200_v26, 0.0 }
 0x11a   :  { %v361_v23 = vpop.f32.mrf.mxu1 }
 0x11b   :  { %v362_v24 = vadd.f32 %v1029_v20, %v361_v23 }
 0x11d   :  { %v440_v27 = vmax.f32 %v362_v24, 0.0 }
 0x11e   :  { %v201_v28 = vpop.f32.mrf.mxu0  ;;  %v419_v8 = vpop.f32.mrf.mxu3 }
 0x11f   :  { %v471_v29 = vpack.c.bf16 %v440_v27, %v439_v25  ;;  %v202_v30 = vadd.f32 %v958_v44, %v201_v28  ;;  %v420_v13 = vadd.f32 %v1029_v20, %v419_v8 }
 0x121   :  { %v253_v32 = vmax.f32 %v202_v30, 0.0  ;;  %750 = vmatmul.msk.bf16.vlgmr.msra.gmra.mxu2 %vm96_vm0, %v471_v29  ;;  %v463_v16 = vmax.f32 %v420_v13, 0.0 }
 0x122   :  { %v364_v33 = vpop.f32.mrf.mxu1 }
 0x123   :  { %v275_v34 = vpack.c.bf16 %v253_v32, %v252_v31  ;;  %v365_v36 = vadd.f32 %v1029_v20, %v364_v33 }
 0x125   :  { %735 = vmatmul.msk.bf16.gmra.mxu1 %vm96_vm0, %v275_v34  ;;  %v441_v39 = vmax.f32 %v365_v36, 0.0 }
 0x126   :  { %v204_v35 = vpop.f32.mrf.mxu0  ;;  %v421_v15 = vpop.f32.mrf.mxu3 }
 0x127   :  { %v205_v40 = vadd.f32 %v958_v44, %v204_v35  ;;  %v422_v17 = vadd.f32 %v1029_v20, %v421_v15 }
 0x129   :  { %v254_v46 = vmax.f32 %v205_v40, 0.0  ;;  %v464_v18 = vmax.f32 %v422_v17, 0.0 }
 0x12a   :  { %v366_v37 = vpop.f32.mrf.mxu1 }
 0x12b   :  { %v367_v38 = vadd.f32 %v1029_v20, %v366_v37  ;;  %v483_v19 = vpack.c.bf16 %v464_v18, %v463_v16 }
 0x12d   :  { %v442_v41 = vmax.f32 %v367_v38, 0.0  ;;  %762 = vmatmul.msk.bf16.vlgmr.msra.gmra.mxu3 %vm96_vm0, %v483_v19 }
 0x12e   :  { %v206_v42 = vpop.f32.mrf.mxu0  ;;  %v424_v23 = vpop.f32.mrf.mxu3 }
 0x12f   :  { %v472_v43 = vpack.c.bf16 %v442_v41, %v441_v39  ;;  %v207_v45 = vadd.f32 %v958_v44, %v206_v42  ;;  %v425_v28 = vadd.f32 %v1029_v20, %v424_v23 }
 0x131   :  { %v255_v47 = vmax.f32 %v207_v45, 0.0  ;;  %751 = vmatmul.msk.bf16.gmra.mxu2 %vm96_vm0, %v472_v43  ;;  %v465_v31 = vmax.f32 %v425_v28, 0.0 }
 0x132   :  { %v369_v48 = vpop.f32.mrf.mxu1 }
 0x133   :  { %v276_v49 = vpack.c.bf16 %v255_v47, %v254_v46  ;;  %v370_v51 = vadd.f32 %v1029_v20, %v369_v48 }
 0x135   :  { %736 = vmatmul.msk.bf16.gmra.mxu1 %vm96_vm0, %v276_v49  ;;  %v443_v54 = vmax.f32 %v370_v51, 0.0 }
 0x136   :  { %v209_v50 = vpop.f32.mrf.mxu0  ;;  %v426_v30 = vpop.f32.mrf.mxu3 }
 0x137   :  { %v210_v55 = vadd.f32 %v958_v44, %v209_v50  ;;  %v427_v32 = vadd.f32 %v1029_v20, %v426_v30 }
 0x139   :  { %v256_v60 = vmax.f32 %v210_v55, 0.0  ;;  %v466_v33 = vmax.f32 %v427_v32, 0.0 }
 0x13a   :  { %v371_v52 = vpop.f32.mrf.mxu1 }
 0x13b   :  { %v372_v53 = vadd.f32 %v1029_v20, %v371_v52  ;;  %v484_v34 = vpack.c.bf16 %v466_v33, %v465_v31 }
 0x13d   :  { %v444_v56 = vmax.f32 %v372_v53, 0.0  ;;  %763 = vmatmul.msk.bf16.gmra.mxu3 %vm96_vm0, %v484_v34 }
 0x13e   :  { %v211_v57 = vpop.f32.mrf.mxu0  ;;  %v429_v37 = vpop.f32.mrf.mxu3 }
 0x13f   :  { %v473_v58 = vpack.c.bf16 %v444_v56, %v443_v54  ;;  %v212_v59 = vadd.f32 %v958_v44, %v211_v57  ;;  %v430_v42 = vadd.f32 %v1029_v20, %v429_v37 }
 0x141   :  { %v257_v61 = vmax.f32 %v212_v59, 0.0  ;;  %752 = vmatmul.msk.bf16.gmra.mxu2 %vm96_vm0, %v473_v58  ;;  %v467_v46 = vmax.f32 %v430_v42, 0.0 }
 0x142   :  { %v374_v62 = vpop.f32.mrf.mxu1 }
 0x143   :  { %v277_v63 = vpack.c.bf16 %v257_v61, %v256_v60  ;;  %v375_v0 = vadd.f32 %v1029_v20, %v374_v62 }
 0x145   :  { %737 = vmatmul.msk.bf16.gmra.mxu1 %vm96_vm0, %v277_v63  ;;  %v445_v3 = vmax.f32 %v375_v0, 0.0 }
 0x146   :  { %v431_v45 = vpop.f32.mrf.mxu3 }
 0x147   :  { %v432_v47 = vadd.f32 %v1029_v20, %v431_v45 }
 0x149   :  { %v468_v48 = vmax.f32 %v432_v47, 0.0 }
 0x14a   :  { %v376_v1 = vpop.f32.mrf.mxu1 }
 0x14b   :  { %v377_v2 = vadd.f32 %v1029_v20, %v376_v1  ;;  %v485_v49 = vpack.c.bf16 %v468_v48, %v467_v46 }
 0x14d   :  { %v446_v4 = vmax.f32 %v377_v2, 0.0  ;;  %764 = vmatmul.msk.bf16.gmra.mxu3 %vm96_vm0, %v485_v49 }
 0x14e   :  { %v434_v52 = vpop.f32.mrf.mxu3 }
 0x14f   :  { %v474_v5 = vpack.c.bf16 %v446_v4, %v445_v3  ;;  %v435_v57 = vadd.f32 %v1029_v20, %v434_v52 }
 0x151   :  { %753 = vmatmul.msk.bf16.gmra.mxu2 %vm96_vm0, %v474_v5  ;;  %v469_v60 = vmax.f32 %v435_v57, 0.0 }
 0x152   :  { %v379_v6 = vpop.f32.mrf.mxu1 }
 0x153   :  { %v380_v44 = vadd.f32 %v1029_v20, %v379_v6  ;;  %v1083_v6 = vld [vmem:[%s1135_s6] ss:$0 sm:$0xff]  ;;  %s810_s6 = smov [#allocation2]  }
 0x154   :  { %s680_s29 = sshll.u32 %s810_s6, 4  ;;  %s681_s29 = int_to_ptr.vmem [resolvable:$true] %s680_s29 }
 0x155   :  { %v447_v10 = vmax.f32 %v380_v44, 0.0 }
 0x156   :  { %v436_v59 = vpop.f32.mrf.mxu3 }
 0x157   :  { %v437_v61 = vadd.f32 %v1029_v20, %v436_v59 }
 0x159   :  { %v470_v62 = vmax.f32 %v437_v61, 0.0 }
 0x15a   :  { %v381_v7 = vpop.f32.mrf.mxu1 }
 0x15b   :  { %v382_v9 = vadd.f32 %v1029_v20, %v381_v7  ;;  %v486_v63 = vpack.c.bf16 %v470_v62, %v469_v60 }
 0x15d   :  { %v448_v11 = vmax.f32 %v382_v9, 0.0  ;;  %765 = vmatmul.msk.bf16.gmra.mxu3 %vm96_vm0, %v486_v63 }
 0x15f   :  { %v475_v12 = vpack.c.bf16 %v448_v11, %v447_v10 }
 0x161   :  { %754 = vmatmul.msk.bf16.gmra.mxu2 %vm96_vm0, %v475_v12 }
 0x162   :  { %v384_v14 = vpop.f32.mrf.mxu1 }
 0x163   :  { %v385_v21 = vadd.f32 %v1029_v20, %v384_v14 }
 0x165   :  { %v449_v25 = vmax.f32 %v385_v21, 0.0 }
 0x16a   :  { %v386_v22 = vpop.f32.mrf.mxu1 }
 0x16b   :  { %v387_v24 = vadd.f32 %v1029_v20, %v386_v22 }
 0x16d   :  { %v450_v26 = vmax.f32 %v387_v24, 0.0 }
 0x16f   :  { %v476_v27 = vpack.c.bf16 %v450_v26, %v449_v25 }
 0x171   :  { %755 = vmatmul.msk.bf16.gmra.mxu2 %vm96_vm0, %v476_v27 }
 0x172   :  { %v389_v29 = vpop.f32.mrf.mxu1 }
 0x173   :  { %v390_v35 = vadd.f32 %v1029_v20, %v389_v29 }
 0x175   :  { %v451_v39 = vmax.f32 %v390_v35, 0.0 }
 0x17a   :  { %v391_v36 = vpop.f32.mrf.mxu1 }
 0x17b   :  { %v392_v38 = vadd.f32 %v1029_v20, %v391_v36 }
 0x17d   :  { %v452_v40 = vmax.f32 %v392_v38, 0.0 }
 0x17f   :  { %v477_v41 = vpack.c.bf16 %v452_v40, %v451_v39 }
 0x181   :  { %756 = vmatmul.msk.bf16.gmra.mxu2 %vm96_vm0, %v477_v41 }
 0x182   :  { %v394_v43 = vpop.f32.mrf.mxu1 }
 0x183   :  { %v395_v50 = vadd.f32 %v1029_v20, %v394_v43 }
 0x185   :  { %v453_v54 = vmax.f32 %v395_v50, 0.0 }
 0x18a   :  { %v396_v51 = vpop.f32.mrf.mxu1 }
 0x18b   :  { %v397_v53 = vadd.f32 %v1029_v20, %v396_v51 }
 0x18d   :  { %v454_v55 = vmax.f32 %v397_v53, 0.0 }
 0x18f   :  { %v478_v56 = vpack.c.bf16 %v454_v55, %v453_v54 }
 0x191   :  { %757 = vmatmul.msk.bf16.gmra.mxu2 %vm96_vm0, %v478_v56 }
 0x192   :  { %v399_v58 = vpop.f32.mrf.mxu1 }
 0x193   :  { %v400_v0 = vadd.f32 %v1029_v20, %v399_v58 }
 0x195   :  { %v455_v3 = vmax.f32 %v400_v0, 0.0 }
 0x19a   :  { %v401_v1 = vpop.f32.mrf.mxu1 }
 0x19b   :  { %v402_v2 = vadd.f32 %v1029_v20, %v401_v1 }
 0x19d   :  { %v456_v4 = vmax.f32 %v402_v2, 0.0 }
 0x19f   :  { %v479_v5 = vpack.c.bf16 %v456_v4, %v455_v3 }
 0x1a1   :  { %758 = vmatmul.msk.bf16.gmra.mxu2 %vm96_vm0, %v479_v5 }
 0x1a2   :  { %v404_v44 = vpop.f32.mrf.mxu1 }
 0x1a3   :  { %v405_v9 = vadd.f32 %v1029_v20, %v404_v44 }
 0x1a4   :  { %v564_v7 = vpop.f32.mrf.mxu2 }
 0x1a5   :  { %v565_v8 = vadd.f32 %v1083_v6, %v564_v7  ;;  %v457_v13 = vmax.f32 %v405_v9, 0.0 }
 0x1a7   :  { %644 = vst [vmem:[#allocation2] sm:$0xff] %v565_v8 }
 0x1aa   :  { %v406_v10 = vpop.f32.mrf.mxu1 }
 0x1ab   :  { %v407_v11 = vadd.f32 %v1029_v20, %v406_v10 }
 0x1ac   :  { %v566_v12 = vpop.f32.mrf.mxu2 }
 0x1ad   :  { %v458_v14 = vmax.f32 %v407_v11, 0.0  ;;  %v567_v15 = vadd.f32 %v1083_v6, %v566_v12 }
 0x1af   :  { %v480_v16 = vpack.c.bf16 %v458_v14, %v457_v13  ;;  %645 = vst [vmem:[#allocation2 + $0x8] sm:$0xff] %v567_v15 }
 0x1b0   :  { %v624_v47 = vpop.f32.mrf.mxu3 }
 0x1b1   :  { %759 = vmatmul.msk.bf16.gmra.mxu2 %vm96_vm0, %v480_v16  ;;  %v625_v49 = vadd.f32 %v1083_v6, %v624_v47 }
 0x1b2   :  { %v409_v17 = vpop.f32.mrf.mxu1 }
 0x1b3   :  { %v410_v21 = vadd.f32 %v1029_v20, %v409_v17  ;;  %668 = vst [vmem:[#allocation2 + $0xc0] sm:$0xff] %v625_v49 }
 0x1b4   :  { %v569_v18 = vpop.f32.mrf.mxu2 }
 0x1b5   :  { %v570_v19 = vadd.f32 %v1083_v6, %v569_v18  ;;  %v459_v25 = vmax.f32 %v410_v21, 0.0 }
 0x1b7   :  { %646 = vst [vmem:[#allocation2 + $0x10] sm:$0xff] %v570_v19 }
 0x1b8   :  { %v626_v51 = vpop.f32.mrf.mxu3 }
 0x1b9   :  { %v627_v53 = vadd.f32 %v1083_v6, %v626_v51 }
 0x1ba   :  { %v411_v22 = vpop.f32.mrf.mxu1 }
 0x1bb   :  { %v412_v23 = vadd.f32 %v1029_v20, %v411_v22  ;;  %669 = vst [vmem:[#allocation2 + $0xc8] sm:$0xff] %v627_v53 }
 0x1bc   :  { %v571_v24 = vpop.f32.mrf.mxu2 }
 0x1bd   :  { %v460_v26 = vmax.f32 %v412_v23, 0.0  ;;  %v572_v27 = vadd.f32 %v1083_v6, %v571_v24 }
 0x1bf   :  { %v481_v28 = vpack.c.bf16 %v460_v26, %v459_v25  ;;  %647 = vst [vmem:[#allocation2 + $0x18] sm:$0xff] %v572_v27 }
 0x1c0   :  { %v629_v55 = vpop.f32.mrf.mxu3 }
 0x1c1   :  { %760 = vmatmul.msk.bf16.gmra.mxu2 %vm96_vm0, %v481_v28  ;;  %v630_v57 = vadd.f32 %v1083_v6, %v629_v55 }
 0x1c2   :  { %v414_v29 = vpop.f32.mrf.mxu1 }
 0x1c3   :  { %v415_v32 = vadd.f32 %v1029_v20, %v414_v29  ;;  %670 = vst [vmem:[#allocation2 + $0xd0] sm:$0xff] %v630_v57 }
 0x1c4   :  { %v574_v30 = vpop.f32.mrf.mxu2 }
 0x1c5   :  { %v575_v31 = vadd.f32 %v1083_v6, %v574_v30  ;;  %v461_v36 = vmax.f32 %v415_v32, 0.0 }
 0x1c7   :  { %648 = vst [vmem:[#allocation2 + $0x20] sm:$0xff] %v575_v31 }
 0x1c8   :  { %v631_v59 = vpop.f32.mrf.mxu3 }
 0x1c9   :  { %v632_v61 = vadd.f32 %v1083_v6, %v631_v59 }
 0x1ca   :  { %v416_v33 = vpop.f32.mrf.mxu1 }
 0x1cb   :  { %v417_v34 = vadd.f32 %v1029_v20, %v416_v33  ;;  %671 = vst [vmem:[#allocation2 + $0xd8] sm:$0xff] %v632_v61 }
 0x1cc   :  { %v576_v35 = vpop.f32.mrf.mxu2 }
 0x1cd   :  { %v462_v37 = vmax.f32 %v417_v34, 0.0  ;;  %v577_v38 = vadd.f32 %v1083_v6, %v576_v35 }
 0x1cf   :  { %v482_v39 = vpack.c.bf16 %v462_v37, %v461_v36  ;;  %649 = vst [vmem:[#allocation2 + $0x28] sm:$0xff] %v577_v38 }
 0x1d0   :  { %v634_v63 = vpop.f32.mrf.mxu3 }
 0x1d1   :  { %761 = vmatmul.msk.bf16.gmra.mxu2 %vm96_vm0, %v482_v39  ;;  %v635_v1 = vadd.f32 %v1083_v6, %v634_v63 }
 0x1d3   :  { %672 = vst [vmem:[#allocation2 + $0xe0] sm:$0xff] %v635_v1 }
 0x1d4   :  { %v579_v40 = vpop.f32.mrf.mxu2 }
 0x1d5   :  { %v580_v41 = vadd.f32 %v1083_v6, %v579_v40 }
 0x1d7   :  { %650 = vst [vmem:[#allocation2 + $0x30] sm:$0xff] %v580_v41 }
 0x1d8   :  { %v636_v3 = vpop.f32.mrf.mxu3 }
 0x1d9   :  { %v637_v5 = vadd.f32 %v1083_v6, %v636_v3 }
 0x1db   :  { %673 = vst [vmem:[#allocation2 + $0xe8] sm:$0xff] %v637_v5 }
 0x1dc   :  { %v581_v42 = vpop.f32.mrf.mxu2 }
 0x1dd   :  { %v582_v43 = vadd.f32 %v1083_v6, %v581_v42 }
 0x1df   :  { %651 = vst [vmem:[#allocation2 + $0x38] sm:$0xff] %v582_v43 }
 0x1e0   :  { %v639_v7 = vpop.f32.mrf.mxu3 }
 0x1e1   :  { %v640_v9 = vadd.f32 %v1083_v6, %v639_v7 }
 0x1e3   :  { %674 = vst [vmem:[#allocation2 + $0xf0] sm:$0xff] %v640_v9 }
 0x1e4   :  { %v584_v45 = vpop.f32.mrf.mxu2 }
 0x1e5   :  { %v585_v20 = vadd.f32 %v1083_v6, %v584_v45 }
 0x1e7   :  { %652 = vst [vmem:[#allocation2 + $0x40] sm:$0xff] %v585_v20 }
 0x1e8   :  { %v641_v11 = vpop.f32.mrf.mxu3 }
 0x1e9   :  { %v642_v13 = vadd.f32 %v1083_v6, %v641_v11 }
 0x1eb   :  { %675 = vst [vmem:[#allocation2 + $0xf8] sm:$0xff] %v642_v13 }
 0x1ec   :  { %v586_v46 = vpop.f32.mrf.mxu2 }
 0x1ed   :  { %v587_v48 = vadd.f32 %v1083_v6, %v586_v46 }
 0x1ef   :  { %653 = vst [vmem:[#allocation2 + $0x48] sm:$0xff] %v587_v48 }
 0x1f4   :  { %v589_v50 = vpop.f32.mrf.mxu2 }
 0x1f5   :  { %v590_v52 = vadd.f32 %v1083_v6, %v589_v50 }
 0x1f7   :  { %654 = vst [vmem:[#allocation2 + $0x50] sm:$0xff] %v590_v52 }
 0x1fc   :  { %v591_v54 = vpop.f32.mrf.mxu2 }
 0x1fd   :  { %v592_v56 = vadd.f32 %v1083_v6, %v591_v54 }
 0x1ff   :  { %655 = vst [vmem:[#allocation2 + $0x58] sm:$0xff] %v592_v56 }
 0x204   :  { %v594_v58 = vpop.f32.mrf.mxu2 }
 0x205   :  { %v595_v60 = vadd.f32 %v1083_v6, %v594_v58 }
 0x207   :  { %656 = vst [vmem:[#allocation2 + $0x60] sm:$0xff] %v595_v60 }
 0x20c   :  { %v596_v62 = vpop.f32.mrf.mxu2 }
 0x20d   :  { %v597_v0 = vadd.f32 %v1083_v6, %v596_v62 }
 0x20f   :  { %657 = vst [vmem:[#allocation2 + $0x68] sm:$0xff] %v597_v0 }
 0x214   :  { %v599_v2 = vpop.f32.mrf.mxu2 }
 0x215   :  { %v600_v4 = vadd.f32 %v1083_v6, %v599_v2 }
 0x217   :  { %658 = vst [vmem:[#allocation2 + $0x70] sm:$0xff] %v600_v4 }
 0x21c   :  { %v601_v44 = vpop.f32.mrf.mxu2 }
 0x21d   :  { %v602_v8 = vadd.f32 %v1083_v6, %v601_v44 }
 0x21f   :  { %659 = vst [vmem:[#allocation2 + $0x78] sm:$0xff] %v602_v8 }
 0x224   :  { %v604_v10 = vpop.f32.mrf.mxu2 }
 0x225   :  { %v605_v12 = vadd.f32 %v1083_v6, %v604_v10 }
 0x227   :  { %660 = vst [vmem:[#allocation2 + $0x80] sm:$0xff] %v605_v12 }
 0x22c   :  { %v606_v14 = vpop.f32.mrf.mxu2 }
 0x22d   :  { %v607_v15 = vadd.f32 %v1083_v6, %v606_v14 }
 0x22f   :  { %661 = vst [vmem:[#allocation2 + $0x88] sm:$0xff] %v607_v15 }
 0x234   :  { %v609_v16 = vpop.f32.mrf.mxu2 }
 0x235   :  { %v610_v17 = vadd.f32 %v1083_v6, %v609_v16 }
 0x237   :  { %662 = vst [vmem:[#allocation2 + $0x90] sm:$0xff] %v610_v17 }
 0x23c   :  { %v611_v18 = vpop.f32.mrf.mxu2 }
 0x23d   :  { %v612_v19 = vadd.f32 %v1083_v6, %v611_v18 }
 0x23f   :  { %663 = vst [vmem:[#allocation2 + $0x98] sm:$0xff] %v612_v19 }
 0x244   :  { %v614_v21 = vpop.f32.mrf.mxu2 }
 0x245   :  { %v615_v22 = vadd.f32 %v1083_v6, %v614_v21 }
 0x247   :  { %664 = vst [vmem:[#allocation2 + $0xa0] sm:$0xff] %v615_v22 }
 0x24c   :  { %v616_v23 = vpop.f32.mrf.mxu2 }
 0x24d   :  { %v617_v24 = vadd.f32 %v1083_v6, %v616_v23 }
 0x24f   :  { %665 = vst [vmem:[#allocation2 + $0xa8] sm:$0xff] %v617_v24 }
 0x254   :  { %v619_v25 = vpop.f32.mrf.mxu2 }
 0x255   :  { %v620_v26 = vadd.f32 %v1083_v6, %v619_v25 }
 0x257   :  { %666 = vst [vmem:[#allocation2 + $0xb0] sm:$0xff] %v620_v26 }
 0x25c   :  { %v621_v27 = vpop.f32.mrf.mxu2 }
 0x25d   :  { %v622_v28 = vadd.f32 %v1083_v6, %v621_v27 }
 0x25f   :  { %667 = vst [vmem:[#allocation2 + $0xb8] sm:$0xff] %v622_v28 }
 0x260   :  { %688 = dma.vmem_to_hbm [thread:$0]  %s681_s29, 4096, %s683_s3, [#allocation3], %s811_s9, %s811_s9, %s812_s10  }
 0x261   :  { %808 = dma.done.wait [#allocation3], 4096  }
 0x262   :  { %809 = vsyncadd [#allocation3], 4294963200 }
 0x263   :  { %693 = vsyncpa [#allocation3], 1 }

// kernel: tpu_custom_call.1
= control target key start
LH: loop header
LB: loop body
LE: loop exit
PB: predicated region body
PF: predicated region fallthrough
CT: control target
= control target key end

     0   :  { %s1129_s0 = inlined_call_operand.vmem [shape: f32[256,32], index: 0, kind: input, shape index: {}]   ;;  %s1130_s1 = inlined_call_operand.vmem [shape: bf16[32,32], index: 1, kind: input, shape index: {}]   ;;  %s1131_s2 = inlined_call_operand.vmem [shape: f32[1,32], index: 2, kind: input, shape index: {}]   ;;  %s1132_s3 = inlined_call_operand.vmem [shape: bf16[32,32], index: 3, kind: input, shape index: {}]   ;;  %s1133_s4 = inlined_call_operand.vmem [shape: f32[1,32], index: 4, kind: input, shape index: {}]   ;;  %s1134_s5 = inlined_call_operand.vmem [shape: bf16[32,128], index: 5, kind: input, shape index: {}]   ;;  %s1135_s6 = inlined_call_operand.vmem [shape: f32[1,128], index: 6, kind: input, shape index: {}]   ;;  %s1136_s7 = inlined_call_operand.hbm [shape: f32[256,128], index: 7, kind: output, shape index: {}]  }
   0x1   :  { %v767_v0 = vld [vmem:[%s1130_s1 + $0x8] sm:$0xff]  ;;  %v766_v1 = vld [vmem:[%s1130_s1] sm:$0xff] }
   0x2   :  { %151 = vmatpush.bf16.msra.mxu0 %v767_v0  ;;  %v28_v2 = vld [vmem:[%s1129_s0] sm:$0xff]  ;;  %v29_v3 = vld [vmem:[%s1129_s0 + $0x8] sm:$0xff]  ;;  %772 = vmatpush.bf16.msra.mxu3 %v767_v0 }
   0x3   :  { %12 = vsyncpa [#allocation3], 0  ;;  %v60_v4 = vpack.c.bf16 %v29_v3, %v28_v2  ;;  %vm96_vm0 = vcmask 261120   ;;  %v30_v5 = vld [vmem:[%s1129_s0 + $0x10] sm:$0xff]  ;;  %v31_v6 = vld [vmem:[%s1129_s0 + $0x18] sm:$0xff]  ;;  %s811_s9 = smov 128  }
   0x4   :  { %v61_v7 = vpack.c.bf16 %v31_v6, %v30_v5  ;;  %v32_v8 = vld [vmem:[%s1129_s0 + $0x20] sm:$0xff]  ;;  %v33_v9 = vld [vmem:[%s1129_s0 + $0x28] sm:$0xff]  ;;  %v34_v11 = vld [vmem:[%s1129_s0 + $0x30] sm:$0xff]  ;;  %s812_s10 = smov 8  }
   0x5   :  { %v62_v10 = vpack.c.bf16 %v33_v9, %v32_v8  ;;  %v35_v12 = vld [vmem:[%s1129_s0 + $0x38] sm:$0xff]  ;;  %v52_v14 = vld [vmem:[%s1129_s0 + $0xc0] sm:$0xff]  ;;  %v53_v15 = vld [vmem:[%s1129_s0 + $0xc8] sm:$0xff] }
   0x6   :  { %152 = vmatpush.bf16.msra.mxu0 %v766_v1  ;;  %773 = vmatpush.bf16.msra.mxu3 %v766_v1  ;;  %v63_v13 = vpack.c.bf16 %v35_v12, %v34_v11  ;;  %v72_v16 = vpack.c.bf16 %v53_v15, %v52_v14  ;;  %v36_v17 = vld [vmem:[%s1129_s0 + $0x40] sm:$0xff]  ;;  %v37_v18 = vld [vmem:[%s1129_s0 + $0x48] sm:$0xff]  ;;  %v54_v20 = vld [vmem:[%s1129_s0 + $0xd0] sm:$0xff] }
   0x7   :  { %v64_v19 = vpack.c.bf16 %v37_v18, %v36_v17  ;;  %v55_v21 = vld [vmem:[%s1129_s0 + $0xd8] sm:$0xff]  ;;  %v38_v23 = vld [vmem:[%s1129_s0 + $0x50] sm:$0xff]  ;;  %v56_v26 = vld [vmem:[%s1129_s0 + $0xe0] sm:$0xff] }
   0x8   :  { %v73_v22 = vpack.c.bf16 %v55_v21, %v54_v20  ;;  %v39_v24 = vld [vmem:[%s1129_s0 + $0x58] sm:$0xff]  ;;  %v57_v27 = vld [vmem:[%s1129_s0 + $0xe8] sm:$0xff]  ;;  %v40_v29 = vld [vmem:[%s1129_s0 + $0x60] sm:$0xff] }
   0x9   :  { %702 = vmatmul.msk.bf16.vlgmr.msra.gmra.mxu0 %vm96_vm0, %v60_v4  ;;  %714 = vmatmul.msk.bf16.vlgmr.msra.gmra.mxu3 %vm96_vm0, %v72_v16  ;;  %v65_v25 = vpack.c.bf16 %v39_v24, %v38_v23  ;;  %v74_v28 = vpack.c.bf16 %v57_v27, %v56_v26  ;;  %v41_v30 = vld [vmem:[%s1129_s0 + $0x68] sm:$0xff]  ;;  %v768_v33 = vld [vmem:[%s1132_s3] sm:$0xff]  ;;  %v42_v34 = vld [vmem:[%s1129_s0 + $0x70] sm:$0xff] }
   0xa   :  { %v66_v31 = vpack.c.bf16 %v41_v30, %v40_v29  ;;  %v769_v32 = vld [vmem:[%s1132_s3 + $0x8] sm:$0xff]  ;;  %v43_v35 = vld [vmem:[%s1129_s0 + $0x78] sm:$0xff]  ;;  %v58_v36 = vld [vmem:[%s1129_s0 + $0xf0] sm:$0xff]  ;;  %s682_s3 = sshll.u32 %s1136_s7, 4  ;;  %s683_s3 = int_to_ptr.hbm [resolvable:$true] %s682_s3 }
   0xb   :  { %356 = vmatpush.bf16.msra.mxu1 %v769_v32  ;;  %774 = vmatpush.bf16.msrb.mxu3 %v769_v32  ;;  %v59_v37 = vld [vmem:[%s1129_s0 + $0xf8] sm:$0xff]  ;;  %v67_v39 = vpack.c.bf16 %v43_v35, %v42_v34  ;;  %v44_v40 = vld [vmem:[%s1129_s0 + $0x80] sm:$0xff]  ;;  %v45_v41 = vld [vmem:[%s1129_s0 + $0x88] sm:$0xff] }
   0xc   :  { %v75_v38 = vpack.c.bf16 %v59_v37, %v58_v36  ;;  %v68_v42 = vpack.c.bf16 %v45_v41, %v44_v40  ;;  %v958_v44 = vld [vmem:[%s1131_s2] ss:$0 sm:$0xff]  ;;  %v46_v50 = vld [vmem:[%s1129_s0 + $0x90] sm:$0xff]  ;;  %v47_v51 = vld [vmem:[%s1129_s0 + $0x98] sm:$0xff] }
   0xd   :  { %v69_v53 = vpack.c.bf16 %v47_v51, %v46_v50  ;;  %v48_v60 = vld [vmem:[%s1129_s0 + $0xa0] sm:$0xff]  ;;  %v49_v61 = vld [vmem:[%s1129_s0 + $0xa8] sm:$0xff]  ;;  %v50_v6 = vld [vmem:[%s1129_s0 + $0xb0] sm:$0xff] }
   0xe   :  { %v70_v63 = vpack.c.bf16 %v49_v61, %v48_v60 }
   0xf   :  { %357 = vmatpush.bf16.msra.mxu1 %v768_v33  ;;  %775 = vmatpush.bf16.msrb.mxu3 %v768_v33 }
  0x19   :  { %703 = vmatmul.msk.bf16.gmra.mxu0 %vm96_vm0, %v61_v7  ;;  %715 = vmatmul.msk.bf16.gmra.mxu3 %vm96_vm0, %v73_v22  ;;  %v51_v7 = vld [vmem:[%s1129_s0 + $0xb8] sm:$0xff] }
  0x1a   :  { %v71_v9 = vpack.c.bf16 %v51_v7, %v50_v6 }
  0x29   :  { %704 = vmatmul.msk.bf16.gmra.mxu0 %vm96_vm0, %v62_v10  ;;  %716 = vmatmul.msk.bf16.gmra.mxu3 %vm96_vm0, %v74_v28 }
  0x39   :  { %705 = vmatmul.msk.bf16.gmra.mxu0 %vm96_vm0, %v63_v13  ;;  %717 = vmatmul.msk.bf16.gmra.mxu3 %vm96_vm0, %v75_v38 }
  0x49   :  { %706 = vmatmul.msk.bf16.gmra.mxu0 %vm96_vm0, %v64_v19 }
  0x59   :  { %707 = vmatmul.msk.bf16.gmra.mxu0 %vm96_vm0, %v65_v25 }
  0x69   :  { %708 = vmatmul.msk.bf16.gmra.mxu0 %vm96_vm0, %v66_v31 }
  0x79   :  { %709 = vmatmul.msk.bf16.gmra.mxu0 %vm96_vm0, %v67_v39 }
  0x86   :  { %v154_v43 = vpop.f32.mrf.mxu0 }
  0x87   :  { %v155_v45 = vadd.f32 %v958_v44, %v154_v43 }
  0x89   :  { %710 = vmatmul.msk.bf16.gmra.mxu0 %vm96_vm0, %v68_v42  ;;  %v234_v48 = vmax.f32 %v155_v45, 0.0 }
  0x8c   :  { %v214_v18 = vpop.f32.mrf.mxu3 }
  0x8d   :  { %v215_v20 = vadd.f32 %v958_v44, %v214_v18 }
  0x8e   :  { %v156_v46 = vpop.f32.mrf.mxu0 }
  0x8f   :  { %v157_v47 = vadd.f32 %v958_v44, %v156_v46  ;;  %v258_v26 = vmax.f32 %v215_v20, 0.0  ;;  %v1029_v20 = vld [vmem:[%s1133_s4] ss:$0 sm:$0xff] }
  0x91   :  { %v235_v49 = vmax.f32 %v157_v47, 0.0 }
  0x93   :  { %v266_v52 = vpack.c.bf16 %v235_v49, %v234_v48 }
  0x94   :  { %v216_v23 = vpop.f32.mrf.mxu3 }
  0x95   :  { %726 = vmatmul.msk.bf16.vlgmr.msra.gmra.mxu1 %vm96_vm0, %v266_v52  ;;  %v217_v27 = vadd.f32 %v958_v44, %v216_v23 }
  0x96   :  { %v159_v54 = vpop.f32.mrf.mxu0 }
  0x97   :  { %v160_v55 = vadd.f32 %v958_v44, %v159_v54  ;;  %v259_v29 = vmax.f32 %v217_v27, 0.0 }
  0x99   :  { %711 = vmatmul.msk.bf16.gmra.mxu0 %vm96_vm0, %v69_v53  ;;  %v236_v58 = vmax.f32 %v160_v55, 0.0  ;;  %v278_v30 = vpack.c.bf16 %v259_v29, %v258_v26 }
  0x9b   :  { %738 = vmatmul.msk.bf16.vlgmr.msrb.gmra.mxu3 %vm96_vm0, %v278_v30 }
  0x9c   :  { %v219_v32 = vpop.f32.mrf.mxu3 }
  0x9d   :  { %v220_v34 = vadd.f32 %v958_v44, %v219_v32 }
  0x9e   :  { %v161_v56 = vpop.f32.mrf.mxu0 }
  0x9f   :  { %v162_v57 = vadd.f32 %v958_v44, %v161_v56  ;;  %v260_v40 = vmax.f32 %v220_v34, 0.0 }
  0xa1   :  { %v237_v59 = vmax.f32 %v162_v57, 0.0 }
  0xa3   :  { %v267_v62 = vpack.c.bf16 %v237_v59, %v236_v58 }
  0xa4   :  { %v221_v37 = vpop.f32.mrf.mxu3 }
  0xa5   :  { %727 = vmatmul.msk.bf16.gmra.mxu1 %vm96_vm0, %v267_v62  ;;  %v222_v41 = vadd.f32 %v958_v44, %v221_v37  ;;  %v771_v62 = vld [vmem:[%s1134_s5 + $0x8] sm:$0xff] }
  0xa6   :  { %v164_v0 = vpop.f32.mrf.mxu0  ;;  %561 = vmatpush.bf16.msra.mxu2 %v771_v62  ;;  %776 = vmatpush.bf16.msra.mxu3 %v771_v62 }
  0xa7   :  { %v165_v1 = vadd.f32 %v958_v44, %v164_v0  ;;  %v261_v43 = vmax.f32 %v222_v41, 0.0 }
  0xa9   :  { %712 = vmatmul.msk.bf16.gmra.mxu0 %vm96_vm0, %v70_v63  ;;  %v238_v4 = vmax.f32 %v165_v1, 0.0  ;;  %v279_v45 = vpack.c.bf16 %v261_v43, %v260_v40  ;;  %v770_v63 = vld [vmem:[%s1134_s5] sm:$0xff] }
  0xaa   :  { %562 = vmatpush.bf16.msra.mxu2 %v770_v63  ;;  %777 = vmatpush.bf16.msra.mxu3 %v770_v63 }
  0xab   :  { %739 = vmatmul.msk.bf16.gmra.mxu3 %vm96_vm0, %v279_v45 }
  0xac   :  { %v224_v47 = vpop.f32.mrf.mxu3 }
  0xad   :  { %v225_v49 = vadd.f32 %v958_v44, %v224_v47 }
  0xae   :  { %v166_v2 = vpop.f32.mrf.mxu0 }
  0xaf   :  { %v167_v3 = vadd.f32 %v958_v44, %v166_v2  ;;  %v262_v55 = vmax.f32 %v225_v49, 0.0 }
  0xb1   :  { %v239_v5 = vmax.f32 %v167_v3, 0.0 }
  0xb3   :  { %v268_v8 = vpack.c.bf16 %v239_v5, %v238_v4 }
  0xb4   :  { %v226_v52 = vpop.f32.mrf.mxu3 }
  0xb5   :  { %728 = vmatmul.msk.bf16.gmra.mxu1 %vm96_vm0, %v268_v8  ;;  %v227_v56 = vadd.f32 %v958_v44, %v226_v52 }
  0xb6   :  { %v169_v10 = vpop.f32.mrf.mxu0 }
  0xb7   :  { %v170_v11 = vadd.f32 %v958_v44, %v169_v10  ;;  %v263_v58 = vmax.f32 %v227_v56, 0.0 }
  0xb9   :  { %713 = vmatmul.msk.bf16.gmra.mxu0 %vm96_vm0, %v71_v9  ;;  %v240_v14 = vmax.f32 %v170_v11, 0.0  ;;  %v280_v59 = vpack.c.bf16 %v263_v58, %v262_v55 }
  0xbb   :  { %740 = vmatmul.msk.bf16.gmra.mxu3 %vm96_vm0, %v280_v59 }
  0xbc   :  { %v229_v61 = vpop.f32.mrf.mxu3 }
  0xbd   :  { %v230_v1 = vadd.f32 %v958_v44, %v229_v61 }
  0xbe   :  { %v171_v12 = vpop.f32.mrf.mxu0 }
  0xbf   :  { %v172_v13 = vadd.f32 %v958_v44, %v171_v12  ;;  %v264_v7 = vmax.f32 %v230_v1, 0.0 }
  0xc1   :  { %v241_v15 = vmax.f32 %v172_v13, 0.0 }
  0xc3   :  { %v269_v16 = vpack.c.bf16 %v241_v15, %v240_v14 }
  0xc4   :  { %v231_v4 = vpop.f32.mrf.mxu3 }
  0xc5   :  { %729 = vmatmul.msk.bf16.gmra.mxu1 %vm96_vm0, %v269_v16  ;;  %v232_v8 = vadd.f32 %v958_v44, %v231_v4 }
  0xc6   :  { %v174_v17 = vpop.f32.mrf.mxu0 }
  0xc7   :  { %v175_v19 = vadd.f32 %v958_v44, %v174_v17  ;;  %v265_v10 = vmax.f32 %v232_v8, 0.0 }
  0xc9   :  { %v242_v24 = vmax.f32 %v175_v19, 0.0  ;;  %v281_v11 = vpack.c.bf16 %v265_v10, %v264_v7 }
  0xcb   :  { %741 = vmatmul.msk.bf16.gmra.mxu3 %vm96_vm0, %v281_v11 }
  0xce   :  { %v176_v21 = vpop.f32.mrf.mxu0 }
  0xcf   :  { %v177_v22 = vadd.f32 %v958_v44, %v176_v21 }
  0xd1   :  { %v243_v25 = vmax.f32 %v177_v22, 0.0 }
  0xd3   :  { %v270_v28 = vpack.c.bf16 %v243_v25, %v242_v24 }
  0xd5   :  { %730 = vmatmul.msk.bf16.gmra.mxu1 %vm96_vm0, %v270_v28 }
  0xd6   :  { %v179_v31 = vpop.f32.mrf.mxu0 }
  0xd7   :  { %v180_v33 = vadd.f32 %v958_v44, %v179_v31 }
  0xd9   :  { %v244_v38 = vmax.f32 %v180_v33, 0.0 }
  0xde   :  { %v181_v35 = vpop.f32.mrf.mxu0 }
  0xdf   :  { %v182_v36 = vadd.f32 %v958_v44, %v181_v35 }
  0xe1   :  { %v245_v39 = vmax.f32 %v182_v36, 0.0 }
  0xe3   :  { %v271_v42 = vpack.c.bf16 %v245_v39, %v244_v38 }
  0xe5   :  { %731 = vmatmul.msk.bf16.gmra.mxu1 %vm96_vm0, %v271_v42 }
  0xe6   :  { %v184_v46 = vpop.f32.mrf.mxu0 }
  0xe7   :  { %v185_v48 = vadd.f32 %v958_v44, %v184_v46 }
  0xe9   :  { %v246_v53 = vmax.f32 %v185_v48, 0.0 }
  0xee   :  { %v186_v50 = vpop.f32.mrf.mxu0 }
  0xef   :  { %v187_v51 = vadd.f32 %v958_v44, %v186_v50 }
  0xf1   :  { %v247_v54 = vmax.f32 %v187_v51, 0.0 }
  0xf3   :  { %v272_v57 = vpack.c.bf16 %v247_v54, %v246_v53 }
  0xf5   :  { %732 = vmatmul.msk.bf16.gmra.mxu1 %vm96_vm0, %v272_v57 }
  0xf6   :  { %v189_v60 = vpop.f32.mrf.mxu0 }
  0xf7   :  { %v190_v0 = vadd.f32 %v958_v44, %v189_v60 }
  0xf9   :  { %v248_v5 = vmax.f32 %v190_v0, 0.0 }
  0xfe   :  { %v191_v2 = vpop.f32.mrf.mxu0 }
  0xff   :  { %v192_v3 = vadd.f32 %v958_v44, %v191_v2 }
 0x101   :  { %v249_v6 = vmax.f32 %v192_v3, 0.0 }
 0x103   :  { %v273_v9 = vpack.c.bf16 %v249_v6, %v248_v5 }
 0x105   :  { %733 = vmatmul.msk.bf16.gmra.mxu1 %vm96_vm0, %v273_v9 }
 0x106   :  { %v194_v12 = vpop.f32.mrf.mxu0 }
 0x107   :  { %v195_v13 = vadd.f32 %v958_v44, %v194_v12 }
 0x109   :  { %v250_v16 = vmax.f32 %v195_v13, 0.0 }
 0x10e   :  { %v196_v14 = vpop.f32.mrf.mxu0 }
 0x10f   :  { %v197_v15 = vadd.f32 %v958_v44, %v196_v14 }
 0x111   :  { %v251_v17 = vmax.f32 %v197_v15, 0.0 }
 0x112   :  { %v359_v18 = vpop.f32.mrf.mxu1 }
 0x113   :  { %v274_v19 = vpack.c.bf16 %v251_v17, %v250_v16  ;;  %v360_v22 = vadd.f32 %v1029_v20, %v359_v18 }
 0x115   :  { %734 = vmatmul.msk.bf16.gmra.mxu1 %vm96_vm0, %v274_v19  ;;  %v439_v25 = vmax.f32 %v360_v22, 0.0 }
 0x116   :  { %v199_v21 = vpop.f32.mrf.mxu0 }
 0x117   :  { %v200_v26 = vadd.f32 %v958_v44, %v199_v21 }
 0x119   :  { %v252_v31 = vmax.f32 %v200_v26, 0.0 }
 0x11a   :  { %v361_v23 = vpop.f32.mrf.mxu1 }
 0x11b   :  { %v362_v24 = vadd.f32 %v1029_v20, %v361_v23 }
 0x11d   :  { %v440_v27 = vmax.f32 %v362_v24, 0.0 }
 0x11e   :  { %v201_v28 = vpop.f32.mrf.mxu0  ;;  %v419_v8 = vpop.f32.mrf.mxu3 }
 0x11f   :  { %v471_v29 = vpack.c.bf16 %v440_v27, %v439_v25  ;;  %v202_v30 = vadd.f32 %v958_v44, %v201_v28  ;;  %v420_v13 = vadd.f32 %v1029_v20, %v419_v8 }
 0x121   :  { %v253_v32 = vmax.f32 %v202_v30, 0.0  ;;  %750 = vmatmul.msk.bf16.vlgmr.msra.gmra.mxu2 %vm96_vm0, %v471_v29  ;;  %v463_v16 = vmax.f32 %v420_v13, 0.0 }
 0x122   :  { %v364_v33 = vpop.f32.mrf.mxu1 }
 0x123   :  { %v275_v34 = vpack.c.bf16 %v253_v32, %v252_v31  ;;  %v365_v36 = vadd.f32 %v1029_v20, %v364_v33 }
 0x125   :  { %735 = vmatmul.msk.bf16.gmra.mxu1 %vm96_vm0, %v275_v34  ;;  %v441_v39 = vmax.f32 %v365_v36, 0.0 }
 0x126   :  { %v204_v35 = vpop.f32.mrf.mxu0  ;;  %v421_v15 = vpop.f32.mrf.mxu3 }
 0x127   :  { %v205_v40 = vadd.f32 %v958_v44, %v204_v35  ;;  %v422_v17 = vadd.f32 %v1029_v20, %v421_v15 }
 0x129   :  { %v254_v46 = vmax.f32 %v205_v40, 0.0  ;;  %v464_v18 = vmax.f32 %v422_v17, 0.0 }
 0x12a   :  { %v366_v37 = vpop.f32.mrf.mxu1 }
 0x12b   :  { %v367_v38 = vadd.f32 %v1029_v20, %v366_v37  ;;  %v483_v19 = vpack.c.bf16 %v464_v18, %v463_v16 }
 0x12d   :  { %v442_v41 = vmax.f32 %v367_v38, 0.0  ;;  %762 = vmatmul.msk.bf16.vlgmr.msra.gmra.mxu3 %vm96_vm0, %v483_v19 }
 0x12e   :  { %v206_v42 = vpop.f32.mrf.mxu0  ;;  %v424_v23 = vpop.f32.mrf.mxu3 }
 0x12f   :  { %v472_v43 = vpack.c.bf16 %v442_v41, %v441_v39  ;;  %v207_v45 = vadd.f32 %v958_v44, %v206_v42  ;;  %v425_v28 = vadd.f32 %v1029_v20, %v424_v23 }
 0x131   :  { %v255_v47 = vmax.f32 %v207_v45, 0.0  ;;  %751 = vmatmul.msk.bf16.gmra.mxu2 %vm96_vm0, %v472_v43  ;;  %v465_v31 = vmax.f32 %v425_v28, 0.0 }
 0x132   :  { %v369_v48 = vpop.f32.mrf.mxu1 }
 0x133   :  { %v276_v49 = vpack.c.bf16 %v255_v47, %v254_v46  ;;  %v370_v51 = vadd.f32 %v1029_v20, %v369_v48 }
 0x135   :  { %736 = vmatmul.msk.bf16.gmra.mxu1 %vm96_vm0, %v276_v49  ;;  %v443_v54 = vmax.f32 %v370_v51, 0.0 }
 0x136   :  { %v209_v50 = vpop.f32.mrf.mxu0  ;;  %v426_v30 = vpop.f32.mrf.mxu3 }
 0x137   :  { %v210_v55 = vadd.f32 %v958_v44, %v209_v50  ;;  %v427_v32 = vadd.f32 %v1029_v20, %v426_v30 }
 0x139   :  { %v256_v60 = vmax.f32 %v210_v55, 0.0  ;;  %v466_v33 = vmax.f32 %v427_v32, 0.0 }
 0x13a   :  { %v371_v52 = vpop.f32.mrf.mxu1 }
 0x13b   :  { %v372_v53 = vadd.f32 %v1029_v20, %v371_v52  ;;  %v484_v34 = vpack.c.bf16 %v466_v33, %v465_v31 }
 0x13d   :  { %v444_v56 = vmax.f32 %v372_v53, 0.0  ;;  %763 = vmatmul.msk.bf16.gmra.mxu3 %vm96_vm0, %v484_v34 }
 0x13e   :  { %v211_v57 = vpop.f32.mrf.mxu0  ;;  %v429_v37 = vpop.f32.mrf.mxu3 }
 0x13f   :  { %v473_v58 = vpack.c.bf16 %v444_v56, %v443_v54  ;;  %v212_v59 = vadd.f32 %v958_v44, %v211_v57  ;;  %v430_v42 = vadd.f32 %v1029_v20, %v429_v37 }
 0x141   :  { %v257_v61 = vmax.f32 %v212_v59, 0.0  ;;  %752 = vmatmul.msk.bf16.gmra.mxu2 %vm96_vm0, %v473_v58  ;;  %v467_v46 = vmax.f32 %v430_v42, 0.0 }
 0x142   :  { %v374_v62 = vpop.f32.mrf.mxu1 }
 0x143   :  { %v277_v63 = vpack.c.bf16 %v257_v61, %v256_v60  ;;  %v375_v0 = vadd.f32 %v1029_v20, %v374_v62 }
 0x145   :  { %737 = vmatmul.msk.bf16.gmra.mxu1 %vm96_vm0, %v277_v63  ;;  %v445_v3 = vmax.f32 %v375_v0, 0.0 }
 0x146   :  { %v431_v45 = vpop.f32.mrf.mxu3 }
 0x147   :  { %v432_v47 = vadd.f32 %v1029_v20, %v431_v45 }
 0x149   :  { %v468_v48 = vmax.f32 %v432_v47, 0.0 }
 0x14a   :  { %v376_v1 = vpop.f32.mrf.mxu1 }
 0x14b   :  { %v377_v2 = vadd.f32 %v1029_v20, %v376_v1  ;;  %v485_v49 = vpack.c.bf16 %v468_v48, %v467_v46 }
 0x14d   :  { %v446_v4 = vmax.f32 %v377_v2, 0.0  ;;  %764 = vmatmul.msk.bf16.gmra.mxu3 %vm96_vm0, %v485_v49 }
 0x14e   :  { %v434_v52 = vpop.f32.mrf.mxu3 }
 0x14f   :  { %v474_v5 = vpack.c.bf16 %v446_v4, %v445_v3  ;;  %v435_v57 = vadd.f32 %v1029_v20, %v434_v52 }
 0x151   :  { %753 = vmatmul.msk.bf16.gmra.mxu2 %vm96_vm0, %v474_v5  ;;  %v469_v60 = vmax.f32 %v435_v57, 0.0 }
 0x152   :  { %v379_v6 = vpop.f32.mrf.mxu1 }
 0x153   :  { %v380_v44 = vadd.f32 %v1029_v20, %v379_v6  ;;  %v1083_v6 = vld [vmem:[%s1135_s6] ss:$0 sm:$0xff]  ;;  %s810_s6 = smov [#allocation2]  }
 0x154   :  { %s680_s29 = sshll.u32 %s810_s6, 4  ;;  %s681_s29 = int_to_ptr.vmem [resolvable:$true] %s680_s29 }
 0x155   :  { %v447_v10 = vmax.f32 %v380_v44, 0.0 }
 0x156   :  { %v436_v59 = vpop.f32.mrf.mxu3 }
 0x157   :  { %v437_v61 = vadd.f32 %v1029_v20, %v436_v59 }
 0x159   :  { %v470_v62 = vmax.f32 %v437_v61, 0.0 }
 0x15a   :  { %v381_v7 = vpop.f32.mrf.mxu1 }
 0x15b   :  { %v382_v9 = vadd.f32 %v1029_v20, %v381_v7  ;;  %v486_v63 = vpack.c.bf16 %v470_v62, %v469_v60 }
 0x15d   :  { %v448_v11 = vmax.f32 %v382_v9, 0.0  ;;  %765 = vmatmul.msk.bf16.gmra.mxu3 %vm96_vm0, %v486_v63 }
 0x15f   :  { %v475_v12 = vpack.c.bf16 %v448_v11, %v447_v10 }
 0x161   :  { %754 = vmatmul.msk.bf16.gmra.mxu2 %vm96_vm0, %v475_v12 }
 0x162   :  { %v384_v14 = vpop.f32.mrf.mxu1 }
 0x163   :  { %v385_v21 = vadd.f32 %v1029_v20, %v384_v14 }
 0x165   :  { %v449_v25 = vmax.f32 %v385_v21, 0.0 }
 0x16a   :  { %v386_v22 = vpop.f32.mrf.mxu1 }
 0x16b   :  { %v387_v24 = vadd.f32 %v1029_v20, %v386_v22 }
 0x16d   :  { %v450_v26 = vmax.f32 %v387_v24, 0.0 }
 0x16f   :  { %v476_v27 = vpack.c.bf16 %v450_v26, %v449_v25 }
 0x171   :  { %755 = vmatmul.msk.bf16.gmra.mxu2 %vm96_vm0, %v476_v27 }
 0x172   :  { %v389_v29 = vpop.f32.mrf.mxu1 }
 0x173   :  { %v390_v35 = vadd.f32 %v1029_v20, %v389_v29 }
 0x175   :  { %v451_v39 = vmax.f32 %v390_v35, 0.0 }
 0x17a   :  { %v391_v36 = vpop.f32.mrf.mxu1 }
 0x17b   :  { %v392_v38 = vadd.f32 %v1029_v20, %v391_v36 }
 0x17d   :  { %v452_v40 = vmax.f32 %v392_v38, 0.0 }
 0x17f   :  { %v477_v41 = vpack.c.bf16 %v452_v40, %v451_v39 }
 0x181   :  { %756 = vmatmul.msk.bf16.gmra.mxu2 %vm96_vm0, %v477_v41 }
 0x182   :  { %v394_v43 = vpop.f32.mrf.mxu1 }
 0x183   :  { %v395_v50 = vadd.f32 %v1029_v20, %v394_v43 }
 0x185   :  { %v453_v54 = vmax.f32 %v395_v50, 0.0 }
 0x18a   :  { %v396_v51 = vpop.f32.mrf.mxu1 }
 0x18b   :  { %v397_v53 = vadd.f32 %v1029_v20, %v396_v51 }
 0x18d   :  { %v454_v55 = vmax.f32 %v397_v53, 0.0 }
 0x18f   :  { %v478_v56 = vpack.c.bf16 %v454_v55, %v453_v54 }
 0x191   :  { %757 = vmatmul.msk.bf16.gmra.mxu2 %vm96_vm0, %v478_v56 }
 0x192   :  { %v399_v58 = vpop.f32.mrf.mxu1 }
 0x193   :  { %v400_v0 = vadd.f32 %v1029_v20, %v399_v58 }
 0x195   :  { %v455_v3 = vmax.f32 %v400_v0, 0.0 }
 0x19a   :  { %v401_v1 = vpop.f32.mrf.mxu1 }
 0x19b   :  { %v402_v2 = vadd.f32 %v1029_v20, %v401_v1 }
 0x19d   :  { %v456_v4 = vmax.f32 %v402_v2, 0.0 }
 0x19f   :  { %v479_v5 = vpack.c.bf16 %v456_v4, %v455_v3 }
 0x1a1   :  { %758 = vmatmul.msk.bf16.gmra.mxu2 %vm96_vm0, %v479_v5 }
 0x1a2   :  { %v404_v44 = vpop.f32.mrf.mxu1 }
 0x1a3   :  { %v405_v9 = vadd.f32 %v1029_v20, %v404_v44 }
 0x1a4   :  { %v564_v7 = vpop.f32.mrf.mxu2 }
 0x1a5   :  { %v565_v8 = vadd.f32 %v1083_v6, %v564_v7  ;;  %v457_v13 = vmax.f32 %v405_v9, 0.0 }
 0x1a7   :  { %644 = vst [vmem:[#allocation2] sm:$0xff] %v565_v8 }
 0x1aa   :  { %v406_v10 = vpop.f32.mrf.mxu1 }
 0x1ab   :  { %v407_v11 = vadd.f32 %v1029_v20, %v406_v10 }
 0x1ac   :  { %v566_v12 = vpop.f32.mrf.mxu2 }
 0x1ad   :  { %v458_v14 = vmax.f32 %v407_v11, 0.0  ;;  %v567_v15 = vadd.f32 %v1083_v6, %v566_v12 }
 0x1af   :  { %v480_v16 = vpack.c.bf16 %v458_v14, %v457_v13  ;;  %645 = vst [vmem:[#allocation2 + $0x8] sm:$0xff] %v567_v15 }
 0x1b0   :  { %v624_v47 = vpop.f32.mrf.mxu3 }
 0x1b1   :  { %759 = vmatmul.msk.bf16.gmra.mxu2 %vm96_vm0, %v480_v16  ;;  %v625_v49 = vadd.f32 %v1083_v6, %v624_v47 }
 0x1b2   :  { %v409_v17 = vpop.f32.mrf.mxu1 }
 0x1b3   :  { %v410_v21 = vadd.f32 %v1029_v20, %v409_v17  ;;  %668 = vst [vmem:[#allocation2 + $0xc0] sm:$0xff] %v625_v49 }
 0x1b4   :  { %v569_v18 = vpop.f32.mrf.mxu2 }
 0x1b5   :  { %v570_v19 = vadd.f32 %v1083_v6, %v569_v18  ;;  %v459_v25 = vmax.f32 %v410_v21, 0.0 }
 0x1b7   :  { %646 = vst [vmem:[#allocation2 + $0x10] sm:$0xff] %v570_v19 }
 0x1b8   :  { %v626_v51 = vpop.f32.mrf.mxu3 }
 0x1b9   :  { %v627_v53 = vadd.f32 %v1083_v6, %v626_v51 }
 0x1ba   :  { %v411_v22 = vpop.f32.mrf.mxu1 }
 0x1bb   :  { %v412_v23 = vadd.f32 %v1029_v20, %v411_v22  ;;  %669 = vst [vmem:[#allocation2 + $0xc8] sm:$0xff] %v627_v53 }
 0x1bc   :  { %v571_v24 = vpop.f32.mrf.mxu2 }
 0x1bd   :  { %v460_v26 = vmax.f32 %v412_v23, 0.0  ;;  %v572_v27 = vadd.f32 %v1083_v6, %v571_v24 }
 0x1bf   :  { %v481_v28 = vpack.c.bf16 %v460_v26, %v459_v25  ;;  %647 = vst [vmem:[#allocation2 + $0x18] sm:$0xff] %v572_v27 }
 0x1c0   :  { %v629_v55 = vpop.f32.mrf.mxu3 }
 0x1c1   :  { %760 = vmatmul.msk.bf16.gmra.mxu2 %vm96_vm0, %v481_v28  ;;  %v630_v57 = vadd.f32 %v1083_v6, %v629_v55 }
 0x1c2   :  { %v414_v29 = vpop.f32.mrf.mxu1 }
 0x1c3   :  { %v415_v32 = vadd.f32 %v1029_v20, %v414_v29  ;;  %670 = vst [vmem:[#allocation2 + $0xd0] sm:$0xff] %v630_v57 }
 0x1c4   :  { %v574_v30 = vpop.f32.mrf.mxu2 }
 0x1c5   :  { %v575_v31 = vadd.f32 %v1083_v6, %v574_v30  ;;  %v461_v36 = vmax.f32 %v415_v32, 0.0 }
 0x1c7   :  { %648 = vst [vmem:[#allocation2 + $0x20] sm:$0xff] %v575_v31 }
 0x1c8   :  { %v631_v59 = vpop.f32.mrf.mxu3 }
 0x1c9   :  { %v632_v61 = vadd.f32 %v1083_v6, %v631_v59 }
 0x1ca   :  { %v416_v33 = vpop.f32.mrf.mxu1 }
 0x1cb   :  { %v417_v34 = vadd.f32 %v1029_v20, %v416_v33  ;;  %671 = vst [vmem:[#allocation2 + $0xd8] sm:$0xff] %v632_v61 }
 0x1cc   :  { %v576_v35 = vpop.f32.mrf.mxu2 }
 0x1cd   :  { %v462_v37 = vmax.f32 %v417_v34, 0.0  ;;  %v577_v38 = vadd.f32 %v1083_v6, %v576_v35 }
 0x1cf   :  { %v482_v39 = vpack.c.bf16 %v462_v37, %v461_v36  ;;  %649 = vst [vmem:[#allocation2 + $0x28] sm:$0xff] %v577_v38 }
 0x1d0   :  { %v634_v63 = vpop.f32.mrf.mxu3 }
 0x1d1   :  { %761 = vmatmul.msk.bf16.gmra.mxu2 %vm96_vm0, %v482_v39  ;;  %v635_v1 = vadd.f32 %v1083_v6, %v634_v63 }
 0x1d3   :  { %672 = vst [vmem:[#allocation2 + $0xe0] sm:$0xff] %v635_v1 }
 0x1d4   :  { %v579_v40 = vpop.f32.mrf.mxu2 }
 0x1d5   :  { %v580_v41 = vadd.f32 %v1083_v6, %v579_v40 }
 0x1d7   :  { %650 = vst [vmem:[#allocation2 + $0x30] sm:$0xff] %v580_v41 }
 0x1d8   :  { %v636_v3 = vpop.f32.mrf.mxu3 }
 0x1d9   :  { %v637_v5 = vadd.f32 %v1083_v6, %v636_v3 }
 0x1db   :  { %673 = vst [vmem:[#allocation2 + $0xe8] sm:$0xff] %v637_v5 }
 0x1dc   :  { %v581_v42 = vpop.f32.mrf.mxu2 }
 0x1dd   :  { %v582_v43 = vadd.f32 %v1083_v6, %v581_v42 }
 0x1df   :  { %651 = vst [vmem:[#allocation2 + $0x38] sm:$0xff] %v582_v43 }
 0x1e0   :  { %v639_v7 = vpop.f32.mrf.mxu3 }
 0x1e1   :  { %v640_v9 = vadd.f32 %v1083_v6, %v639_v7 }
 0x1e3   :  { %674 = vst [vmem:[#allocation2 + $0xf0] sm:$0xff] %v640_v9 }
 0x1e4   :  { %v584_v45 = vpop.f32.mrf.mxu2 }
 0x1e5   :  { %v585_v20 = vadd.f32 %v1083_v6, %v584_v45 }
 0x1e7   :  { %652 = vst [vmem:[#allocation2 + $0x40] sm:$0xff] %v585_v20 }
 0x1e8   :  { %v641_v11 = vpop.f32.mrf.mxu3 }
 0x1e9   :  { %v642_v13 = vadd.f32 %v1083_v6, %v641_v11 }
 0x1eb   :  { %675 = vst [vmem:[#allocation2 + $0xf8] sm:$0xff] %v642_v13 }
 0x1ec   :  { %v586_v46 = vpop.f32.mrf.mxu2 }
 0x1ed   :  { %v587_v48 = vadd.f32 %v1083_v6, %v586_v46 }
 0x1ef   :  { %653 = vst [vmem:[#allocation2 + $0x48] sm:$0xff] %v587_v48 }
 0x1f4   :  { %v589_v50 = vpop.f32.mrf.mxu2 }
 0x1f5   :  { %v590_v52 = vadd.f32 %v1083_v6, %v589_v50 }
 0x1f7   :  { %654 = vst [vmem:[#allocation2 + $0x50] sm:$0xff] %v590_v52 }
 0x1fc   :  { %v591_v54 = vpop.f32.mrf.mxu2 }
 0x1fd   :  { %v592_v56 = vadd.f32 %v1083_v6, %v591_v54 }
 0x1ff   :  { %655 = vst [vmem:[#allocation2 + $0x58] sm:$0xff] %v592_v56 }
 0x204   :  { %v594_v58 = vpop.f32.mrf.mxu2 }
 0x205   :  { %v595_v60 = vadd.f32 %v1083_v6, %v594_v58 }
 0x207   :  { %656 = vst [vmem:[#allocation2 + $0x60] sm:$0xff] %v595_v60 }
 0x20c   :  { %v596_v62 = vpop.f32.mrf.mxu2 }
 0x20d   :  { %v597_v0 = vadd.f32 %v1083_v6, %v596_v62 }
 0x20f   :  { %657 = vst [vmem:[#allocation2 + $0x68] sm:$0xff] %v597_v0 }
 0x214   :  { %v599_v2 = vpop.f32.mrf.mxu2 }
 0x215   :  { %v600_v4 = vadd.f32 %v1083_v6, %v599_v2 }
 0x217   :  { %658 = vst [vmem:[#allocation2 + $0x70] sm:$0xff] %v600_v4 }
 0x21c   :  { %v601_v44 = vpop.f32.mrf.mxu2 }
 0x21d   :  { %v602_v8 = vadd.f32 %v1083_v6, %v601_v44 }
 0x21f   :  { %659 = vst [vmem:[#allocation2 + $0x78] sm:$0xff] %v602_v8 }
 0x224   :  { %v604_v10 = vpop.f32.mrf.mxu2 }
 0x225   :  { %v605_v12 = vadd.f32 %v1083_v6, %v604_v10 }
 0x227   :  { %660 = vst [vmem:[#allocation2 + $0x80] sm:$0xff] %v605_v12 }
 0x22c   :  { %v606_v14 = vpop.f32.mrf.mxu2 }
 0x22d   :  { %v607_v15 = vadd.f32 %v1083_v6, %v606_v14 }
 0x22f   :  { %661 = vst [vmem:[#allocation2 + $0x88] sm:$0xff] %v607_v15 }
 0x234   :  { %v609_v16 = vpop.f32.mrf.mxu2 }
 0x235   :  { %v610_v17 = vadd.f32 %v1083_v6, %v609_v16 }
 0x237   :  { %662 = vst [vmem:[#allocation2 + $0x90] sm:$0xff] %v610_v17 }
 0x23c   :  { %v611_v18 = vpop.f32.mrf.mxu2 }
 0x23d   :  { %v612_v19 = vadd.f32 %v1083_v6, %v611_v18 }
 0x23f   :  { %663 = vst [vmem:[#allocation2 + $0x98] sm:$0xff] %v612_v19 }
 0x244   :  { %v614_v21 = vpop.f32.mrf.mxu2 }
 0x245   :  { %v615_v22 = vadd.f32 %v1083_v6, %v614_v21 }
 0x247   :  { %664 = vst [vmem:[#allocation2 + $0xa0] sm:$0xff] %v615_v22 }
 0x24c   :  { %v616_v23 = vpop.f32.mrf.mxu2 }
 0x24d   :  { %v617_v24 = vadd.f32 %v1083_v6, %v616_v23 }
 0x24f   :  { %665 = vst [vmem:[#allocation2 + $0xa8] sm:$0xff] %v617_v24 }
 0x254   :  { %v619_v25 = vpop.f32.mrf.mxu2 }
 0x255   :  { %v620_v26 = vadd.f32 %v1083_v6, %v619_v25 }
 0x257   :  { %666 = vst [vmem:[#allocation2 + $0xb0] sm:$0xff] %v620_v26 }
 0x25c   :  { %v621_v27 = vpop.f32.mrf.mxu2 }
 0x25d   :  { %v622_v28 = vadd.f32 %v1083_v6, %v621_v27 }
 0x25f   :  { %667 = vst [vmem:[#allocation2 + $0xb8] sm:$0xff] %v622_v28 }
 0x260   :  { %688 = dma.vmem_to_hbm [thread:$0]  %s681_s29, 4096, %s683_s3, [#allocation3], %s811_s9, %s811_s9, %s812_s10  }
 0x261   :  { %808 = dma.done.wait [#allocation3], 4096  }
 0x262   :  { %809 = vsyncadd [#allocation3], 4294963200 }
 0x263   :  { %693 = vsyncpa [#allocation3], 1 }

</bundles_post_ra>
